<compile_context>
chip_gen: v6e
topology: v6e:2x2x1
jax: 0.10.0
libtpu: 0.0.40
codegen_flags: <defaults>
</compile_context>

<pallas_src>
import functools

import numpy as np
import jax
import jax.numpy as jnp
from jax.experimental import pallas as pl
from jax.experimental.pallas import tpu as pltpu

NEG_SLOPE = 0.01  # PyTorch F.leaky_relu default


def _leaky(x):
    return jnp.where(x >= 0, x, NEG_SLOPE * x)


def _rep_spec(shape):
    """BlockSpec for a weight replicated across all grid steps (full array block)."""
    nd = len(shape)
    return pl.BlockSpec(shape, lambda *args, _nd=nd: (0,) * _nd)


# -----------------------------------------------------------------------------
# Fused per-batch layer kernel (all N output rows): Wcompute + softmax + Gconv.
# -----------------------------------------------------------------------------
def fused_layer_kernel(xw_ref, x_ref, adj_ref, dsel_ref, scatj_ref, gathi_ref,
                       w1, b1, w2, b2, w3, b3, w4, b4, wl, bl,
                       fw0, fw1, fb, out_ref, *, apply_relu):
    xw = xw_ref[0]                                # (N, C)   selected edge features
    x = x_ref[0]                                  # (N, F)   node features
    adj = adj_ref[0]                              # (N, N)

    # --- edge MLP, flattened: rows r = i*N + j ---------------------------------
    # dsel[r, k] = delta(k, i) - delta(k, j)  ->  d[r, :] = |xw[i, :] - xw[j, :]|
    d = jnp.abs(jnp.dot(dsel_ref[...], xw, preferred_element_type=jnp.float32))   # (N*N, C)
    h = _leaky(jnp.dot(d, w1[...], preferred_element_type=jnp.float32) + b1[...])
    # TODO(synk): dropout(0.3) would go here; identity in eval mode.
    h = _leaky(jnp.dot(h, w2[...], preferred_element_type=jnp.float32) + b2[...])
    h = _leaky(jnp.dot(h, w3[...], preferred_element_type=jnp.float32) + b3[...])
    h = _leaky(jnp.dot(h, w4[...], preferred_element_type=jnp.float32) + b4[...])
    g = jnp.dot(h, wl[...], preferred_element_type=jnp.float32)                   # (N*N, 1)

    # "reshape" (N*N, 1) -> (N, N) via constant scatter/gather matmuls (no relayout):
    # logits[i, j] = g[i*N + j]
    logits = jnp.dot(gathi_ref[...], g * scatj_ref[...],
                     preferred_element_type=jnp.float32) + bl[...]                # (N, N)

    # --- adjacency mask, diagonal suppression, row softmax ----------------------
    logits = logits * adj
    row = jax.lax.broadcasted_iota(jnp.int32, logits.shape, 0)
    col = jax.lax.broadcasted_iota(jnp.int32, logits.shape, 1)
    logits = logits - (row == col).astype(jnp.float32) * 1e8
    m = jnp.max(logits, axis=1, keepdims=True)
    e = jnp.exp(logits - m)
    w_soft = e * pl.reciprocal(jnp.sum(e, axis=1, keepdims=True), approx=True)    # (N, N)

    # --- Gconv (identity operator folded; Linear + BN folded) -------------------
    y1 = jnp.dot(w_soft, x, preferred_element_type=jnp.float32)                   # (N, F)
    out = (jnp.dot(x, fw0[...], preferred_element_type=jnp.float32)
           + jnp.dot(y1, fw1[...], preferred_element_type=jnp.float32)
           + fb[...])
    if apply_relu:
        out = _leaky(out)
    out_ref[0] = out


# -----------------------------------------------------------------------------
# Fused per-batch LAST-layer kernel: only output row i = 0 is ever used.
# -----------------------------------------------------------------------------
def fused_last_kernel(xw_ref, x_ref, adjcol_ref,
                      w1, b1, w2, b2, w3, b3, w4, b4, wl, bl,
                      fw0, fw1, fb, out_ref):
    xw = xw_ref[0]                                # (N, C)
    x = x_ref[0]                                  # (N, F)
    adj_col = adjcol_ref[0]                       # (N, 1) = adj[b, 0, :] as a column

    # edge MLP only for pairs (0, j)
    d = jnp.abs(xw - xw[0:1, :])                                                  # (N, C)
    h = _leaky(jnp.dot(d, w1[...], preferred_element_type=jnp.float32) + b1[...])
    h = _leaky(jnp.dot(h, w2[...], preferred_element_type=jnp.float32) + b2[...])
    h = _leaky(jnp.dot(h, w3[...], preferred_element_type=jnp.float32) + b3[...])
    h = _leaky(jnp.dot(h, w4[...], preferred_element_type=jnp.float32) + b4[...])
    logit = jnp.dot(h, wl[...], preferred_element_type=jnp.float32) + bl[...]     # (N, 1)

    # mask + suppress j == 0 (diagonal element of row 0) + softmax over j (axis 0)
    logit = logit * adj_col
    j = jax.lax.broadcasted_iota(jnp.int32, logit.shape, 0)
    logit = logit - (j == 0).astype(jnp.float32) * 1e8
    m = jnp.max(logit, axis=0, keepdims=True)
    e = jnp.exp(logit - m)
    w_row = e * pl.reciprocal(jnp.sum(e, axis=0, keepdims=True), approx=True)     # (N, 1)

    # single-row Gconv:  out0 = x[0] @ fw0 + (w_row . x) @ fw1 + fb
    y1 = jnp.sum(w_row * x, axis=0, keepdims=True)                                # (1, F)
    out = (jnp.dot(x[0:1, :], fw0[...], preferred_element_type=jnp.float32)
           + jnp.dot(y1, fw1[...], preferred_element_type=jnp.float32)
           + fb[...])
    out_ref[0] = out                                                              # (1, O)


# -----------------------------------------------------------------------------
# Pallas wrappers
# -----------------------------------------------------------------------------
def fused_layer_apply(xw, x, adj2, wparams, gparams, dsel, scatj, gathi, apply_relu):
    B, N, C = xw.shape
    F = x.shape[-1]
    (w1, b1), (w2, b2), (w3, b3), (w4, b4), (wl, bl) = wparams
    fw0, fw1, fb = gparams
    O = fw0.shape[-1]
    weights = [dsel, scatj, gathi, w1, b1, w2, b2, w3, b3, w4, b4, wl, bl, fw0, fw1, fb]
    kernel = functools.partial(fused_layer_kernel, apply_relu=apply_relu)
    return pl.pallas_call(
        kernel,
        out_shape=jax.ShapeDtypeStruct((B, N, O), jnp.float32),
        grid=(B,),
        in_specs=[pl.BlockSpec((1, N, C), lambda b: (b, 0, 0)),
                  pl.BlockSpec((1, N, F), lambda b: (b, 0, 0)),
                  pl.BlockSpec((1, N, N), lambda b: (b, 0, 0))]
                 + [_rep_spec(w.shape) for w in weights],
        out_specs=pl.BlockSpec((1, N, O), lambda b: (b, 0, 0)),
        compiler_params=pltpu.CompilerParams(dimension_semantics=("parallel",)),
    )(xw, x, adj2, *weights)


def fused_last_apply(xw, x, adjcol, wparams, gparams):
    B, N, C = xw.shape
    F = x.shape[-1]
    (w1, b1), (w2, b2), (w3, b3), (w4, b4), (wl, bl) = wparams
    fw0, fw1, fb = gparams
    O = fw0.shape[-1]
    weights = [w1, b1, w2, b2, w3, b3, w4, b4, wl, bl, fw0, fw1, fb]
    out = pl.pallas_call(
        fused_last_kernel,
        out_shape=jax.ShapeDtypeStruct((B, 1, O), jnp.float32),
        grid=(B,),
        in_specs=[pl.BlockSpec((1, N, C), lambda b: (b, 0, 0)),
                  pl.BlockSpec((1, N, F), lambda b: (b, 0, 0)),
                  pl.BlockSpec((1, N, 1), lambda b: (b, 0, 0))]
                 + [_rep_spec(w.shape) for w in weights],
        out_specs=pl.BlockSpec((1, 1, O), lambda b: (b, 0, 0)),
        compiler_params=pltpu.CompilerParams(dimension_semantics=("parallel",)),
    )(xw, x, adjcol, *weights)
    return out[:, 0, :]


@functools.partial(jax.jit, static_argnums=(3,))
def gnn_forward(x, adj, params, w_list):
    """Forward pass of GNN_nl (num_layers = 1)."""
    B, N, F0 = x.shape
    adj2 = adj[..., 0]                                                 # (B, N, N)
    wl_idx = jnp.asarray(w_list, dtype=jnp.int32)

    # Constant selection matrices for the flattened pairwise-difference trick.
    eye = np.eye(N, dtype=np.float32)
    dsel = jnp.asarray(np.repeat(eye, N, axis=0) - np.tile(eye, (N, 1)))   # (N*N, N)
    scatj = jnp.asarray(np.tile(eye, (N, 1)))                              # (N*N, N)
    gathi = jnp.asarray(np.repeat(eye, N, axis=1))                         # (N, N*N)

    # layer 0 (fused Wcompute + softmax + Gconv + leaky_relu)
    xw = jnp.take(x, wl_idx, axis=2)                                       # (B, N, C)
    x_new = fused_layer_apply(xw, x, adj2, params["w0"], params["g0"],
                              dsel, scatj, gathi, apply_relu=True)         # (B, N, nf//2)
    x_cat = jnp.concatenate([x, x_new], axis=2)

    # last layer: only row i = 0 of the output is used by GNN_nl.
    xw2 = jnp.take(x_cat, wl_idx, axis=2)
    adjcol0 = adj2[:, 0, :][:, :, None]                                    # (B, N, 1)
    return fused_last_apply(xw2, x_cat, adjcol0, params["wl"], params["gl"])


# -----------------------------------------------------------------------------
# Pure-JAX reference (for a numerical sanity check)
# -----------------------------------------------------------------------------
def ref_wcompute(x, adj2, wparams, w_list):
    xw = jnp.take(x, jnp.asarray(w_list), axis=2)                      # (B, N, C)
    d = jnp.abs(xw[:, :, None, :] - xw[:, None, :, :])                 # (B, N, N, C)
    h = d
    for k, (w, b) in enumerate(wparams):
        h = h @ w + b
        if k < 4:
            h = _leaky(h)
    logit = h[..., 0] * adj2
    eye = jnp.eye(x.shape[1], dtype=x.dtype)[None]
    logit = logit - eye * 1e8
    m = logit.max(axis=2, keepdims=True)
    e = jnp.exp(logit - m)
    return e / e.sum(axis=2, keepdims=True)


def ref_gconv(w_soft, x, fw0, fw1, fb, relu):
    y1 = jnp.einsum("bij,bjf->bif", w_soft, x)
    out = x @ fw0 + y1 @ fw1 + fb
    return _leaky(out) if relu else out


def ref_forward(x, adj, params, w_list):
    adj2 = adj[..., 0]
    w_soft = ref_wcompute(x, adj2, params["w0"], w_list)
    fw0, fw1, fb = params["g0"]
    x = jnp.concatenate([x, ref_gconv(w_soft, x, fw0, fw1, fb, True)], axis=2)
    w_soft = ref_wcompute(x, adj2, params["wl"], w_list)
    fw0, fw1, fb = params["gl"]
    out = ref_gconv(w_soft, x, fw0, fw1, fb, False)
    return out[:, 0, :]


# -----------------------------------------------------------------------------
# Deterministic parameter init (BatchNorm eval-mode stats folded into weights)
# -----------------------------------------------------------------------------
def init_params(key, C, nf, F0, train_N_way):
    keys = iter(jax.random.split(key, 64))

    def lin(fi, fo):
        w = jax.random.normal(next(keys), (fi, fo), jnp.float32) / jnp.sqrt(fi)
        b = 0.05 * jax.random.normal(next(keys), (1, fo), jnp.float32)
        return w, b

    def bn_fold(w, b, fo, eps=1e-5):
        gamma = 1.0 + 0.1 * jax.random.normal(next(keys), (fo,), jnp.float32)
        beta = 0.05 * jax.random.normal(next(keys), (fo,), jnp.float32)
        mean = 0.05 * jax.random.normal(next(keys), (fo,), jnp.float32)
        var = 1.0 + 0.5 * jax.random.uniform(next(keys), (fo,), jnp.float32)
        scale = gamma / jnp.sqrt(var + eps)
        return w * scale[None, :], (b - mean[None, :]) * scale[None, :] + beta[None, :]

    def wcompute_p():
        dims = [C, 2 * nf, 2 * nf, nf, nf]        # ratio = [2, 2, 1, 1]
        layers = []
        for a, o in zip(dims[:-1], dims[1:]):
            w, b = lin(a, o)
            layers.append(bn_fold(w, b, o))
        layers.append(lin(nf, 1))                 # conv2d_last: no BN, no activation
        return layers

    def gconv_p(F, O, use_bn):
        w, b = lin(2 * F, O)                      # Linear(J * F, O), J = 2
        if use_bn:
            w, b = bn_fold(w, b, O)
        return w[:F], w[F:], b                    # split -> identity operator folded

    F1 = F0 + nf // 2
    return {
        "w0": wcompute_p(),
        "g0": gconv_p(F0, nf // 2, True),
        "wl": wcompute_p(),
        "gl": gconv_p(F1, train_N_way, False),
    }


if __name__ == "__main__":
    # args: test_N_way=4, clinical_feature_num=2, w_feature_num=4, train_N_way=4
    B, N = 2, 8
    test_N_way, clinical_feature_num, w_feature_num = 4, 2, 4
    train_N_way = 4
    input_features = 10
    nf = 16
    w_list = tuple(range(test_N_way)) + tuple(
        range(test_N_way + clinical_feature_num,
              test_N_way + clinical_feature_num + w_feature_num))
    C = len(w_list)  # = args.w_feature_num + args.test_N_way = 8

    key = jax.random.PRNGKey(0)
    kx, ka, kp = jax.random.split(key, 3)
    x = jax.random.normal(kx, (B, N, input_features), jnp.float32)
    adj = (jax.random.uniform(ka, (B, N, N, 1)) > 0.3).astype(jnp.float32)
    params = init_params(kp, C, nf, input_features, train_N_way)

    out = gnn_forward(x, adj, params, w_list)
    out = jax.block_until_ready(out)

    ref = ref_forward(x, adj, params, w_list)
    assert out.shape == (B, train_N_way), out.shape
    assert bool(jnp.all(jnp.isfinite(out)))
    assert bool(jnp.allclose(out, ref, atol=2e-2, rtol=2e-2)), (out, ref)
    print("KERNEL_OK")
</pallas_src>

<mosaic_0001>
module attributes {stable_mosaic.version = 11 : i64} {
  func.func @fused_layer_kernel(%arg0: i32, %arg1: memref<1x8x8xf32, #tpu.memory_space<vmem>>, %arg2: memref<1x8x10xf32, #tpu.memory_space<vmem>>, %arg3: memref<1x8x8xf32, #tpu.memory_space<vmem>>, %arg4: memref<64x8xf32, #tpu.memory_space<vmem>>, %arg5: memref<64x8xf32, #tpu.memory_space<vmem>>, %arg6: memref<8x64xf32, #tpu.memory_space<vmem>>, %arg7: memref<8x32xf32, #tpu.memory_space<vmem>>, %arg8: memref<1x32xf32, #tpu.memory_space<vmem>>, %arg9: memref<32x32xf32, #tpu.memory_space<vmem>>, %arg10: memref<1x32xf32, #tpu.memory_space<vmem>>, %arg11: memref<32x16xf32, #tpu.memory_space<vmem>>, %arg12: memref<1x16xf32, #tpu.memory_space<vmem>>, %arg13: memref<16x16xf32, #tpu.memory_space<vmem>>, %arg14: memref<1x16xf32, #tpu.memory_space<vmem>>, %arg15: memref<16x1xf32, #tpu.memory_space<vmem>>, %arg16: memref<1x1xf32, #tpu.memory_space<vmem>>, %arg17: memref<10x8xf32, #tpu.memory_space<vmem>>, %arg18: memref<10x8xf32, #tpu.memory_space<vmem>>, %arg19: memref<1x8xf32, #tpu.memory_space<vmem>>, %arg20: memref<1x8x8xf32, #tpu.memory_space<vmem>>) attributes {dimension_semantics = [#tpu.dimension_semantics<parallel>], iteration_bounds = array<i64: 2>, scalar_prefetch = 0 : i64, scratch_operands = 0 : i64, tpu.core_type = #tpu.core_type<tc>, window_params = [{transform_indices = @transform_0, window_bounds = array<i64: 1, 8, 8>}, {transform_indices = @transform_1, window_bounds = array<i64: 1, 8, 10>}, {transform_indices = @transform_2, window_bounds = array<i64: 1, 8, 8>}, {pipeline_mode = #tpu.pipeline_mode<synchronous>, transform_indices = @transform_3, window_bounds = array<i64: 64, 8>}, {pipeline_mode = #tpu.pipeline_mode<synchronous>, transform_indices = @transform_4, window_bounds = array<i64: 64, 8>}, {pipeline_mode = #tpu.pipeline_mode<synchronous>, transform_indices = @transform_5, window_bounds = array<i64: 8, 64>}, {pipeline_mode = #tpu.pipeline_mode<synchronous>, transform_indices = @transform_6, window_bounds = array<i64: 8, 32>}, {pipeline_mode = #tpu.pipeline_mode<synchronous>, transform_indices = @transform_7, window_bounds = array<i64: 1, 32>}, {pipeline_mode = #tpu.pipeline_mode<synchronous>, transform_indices = @transform_8, window_bounds = array<i64: 32, 32>}, {pipeline_mode = #tpu.pipeline_mode<synchronous>, transform_indices = @transform_9, window_bounds = array<i64: 1, 32>}, {pipeline_mode = #tpu.pipeline_mode<synchronous>, transform_indices = @transform_10, window_bounds = array<i64: 32, 16>}, {pipeline_mode = #tpu.pipeline_mode<synchronous>, transform_indices = @transform_11, window_bounds = array<i64: 1, 16>}, {pipeline_mode = #tpu.pipeline_mode<synchronous>, transform_indices = @transform_12, window_bounds = array<i64: 16, 16>}, {pipeline_mode = #tpu.pipeline_mode<synchronous>, transform_indices = @transform_13, window_bounds = array<i64: 1, 16>}, {pipeline_mode = #tpu.pipeline_mode<synchronous>, transform_indices = @transform_14, window_bounds = array<i64: 16, 1>}, {pipeline_mode = #tpu.pipeline_mode<synchronous>, transform_indices = @transform_15, window_bounds = array<i64: 1, 1>}, {pipeline_mode = #tpu.pipeline_mode<synchronous>, transform_indices = @transform_16, window_bounds = array<i64: 10, 8>}, {pipeline_mode = #tpu.pipeline_mode<synchronous>, transform_indices = @transform_17, window_bounds = array<i64: 10, 8>}, {pipeline_mode = #tpu.pipeline_mode<synchronous>, transform_indices = @transform_18, window_bounds = array<i64: 1, 8>}, {transform_indices = @transform_19, window_bounds = array<i64: 1, 8, 8>}]} {
    %c0 = arith.constant 0 : index
    %c0_0 = arith.constant 0 : index
    %c0_1 = arith.constant 0 : index
    %0 = vector.load %arg1[%c0, %c0_0, %c0_1] : memref<1x8x8xf32, #tpu.memory_space<vmem>>, vector<1x8x8xf32>
    %1 = vector.shape_cast %0 : vector<1x8x8xf32> to vector<8x8xf32>
    %c0_2 = arith.constant 0 : index
    %c0_3 = arith.constant 0 : index
    %c0_4 = arith.constant 0 : index
    %2 = vector.load %arg2[%c0_2, %c0_3, %c0_4] : memref<1x8x10xf32, #tpu.memory_space<vmem>>, vector<1x8x10xf32>
    %3 = vector.shape_cast %2 : vector<1x8x10xf32> to vector<8x10xf32>
    %c0_5 = arith.constant 0 : index
    %c0_6 = arith.constant 0 : index
    %c0_7 = arith.constant 0 : index
    %4 = vector.load %arg3[%c0_5, %c0_6, %c0_7] : memref<1x8x8xf32, #tpu.memory_space<vmem>>, vector<1x8x8xf32>
    %5 = vector.shape_cast %4 : vector<1x8x8xf32> to vector<8x8xf32>
    %c0_8 = arith.constant 0 : index
    %c0_9 = arith.constant 0 : index
    %6 = vector.load %arg4[%c0_8, %c0_9] : memref<64x8xf32, #tpu.memory_space<vmem>>, vector<64x8xf32>
    %cst = arith.constant dense<0.000000e+00> : vector<64x8xf32>
    %7 = tpu.matmul %6, %1, %cst {dimension_numbers = #tpu.dot_dimension_numbers<[1], [0], [0], [1], [0, 0, 1, 1], [], []>} : vector<64x8xf32>, vector<8x8xf32>, vector<64x8xf32> -> vector<64x8xf32>
    %8 = math.absf %7 : vector<64x8xf32>
    %c0_10 = arith.constant 0 : index
    %c0_11 = arith.constant 0 : index
    %9 = vector.load %arg7[%c0_10, %c0_11] : memref<8x32xf32, #tpu.memory_space<vmem>>, vector<8x32xf32>
    %cst_12 = arith.constant dense<0.000000e+00> : vector<64x32xf32>
    %10 = tpu.matmul %8, %9, %cst_12 {dimension_numbers = #tpu.dot_dimension_numbers<[1], [0], [0], [1], [0, 0, 1, 1], [], []>} : vector<64x8xf32>, vector<8x32xf32>, vector<64x32xf32> -> vector<64x32xf32>
    %c0_13 = arith.constant 0 : index
    %c0_14 = arith.constant 0 : index
    %11 = vector.load %arg8[%c0_13, %c0_14] : memref<1x32xf32, #tpu.memory_space<vmem>>, vector<1x32xf32>
    %12 = vector.broadcast %11 : vector<1x32xf32> to vector<64x32xf32>
    %13 = arith.addf %10, %12 : vector<64x32xf32>
    %cst_15 = arith.constant 0.000000e+00 : f32
    %14 = vector.broadcast %cst_15 : f32 to vector<64x32xf32>
    %15 = arith.cmpf oge, %13, %14 : vector<64x32xf32>
    %cst_16 = arith.constant 0.00999999977 : f32
    %16 = vector.broadcast %cst_16 : f32 to vector<64x32xf32>
    %17 = arith.mulf %16, %13 : vector<64x32xf32>
    %18 = arith.select %15, %13, %17 : vector<64x32xi1>, vector<64x32xf32>
    %c0_17 = arith.constant 0 : index
    %c0_18 = arith.constant 0 : index
    %19 = vector.load %arg9[%c0_17, %c0_18] : memref<32x32xf32, #tpu.memory_space<vmem>>, vector<32x32xf32>
    %cst_19 = arith.constant dense<0.000000e+00> : vector<64x32xf32>
    %20 = tpu.matmul %18, %19, %cst_19 {dimension_numbers = #tpu.dot_dimension_numbers<[1], [0], [0], [1], [0, 0, 1, 1], [], []>} : vector<64x32xf32>, vector<32x32xf32>, vector<64x32xf32> -> vector<64x32xf32>
    %c0_20 = arith.constant 0 : index
    %c0_21 = arith.constant 0 : index
    %21 = vector.load %arg10[%c0_20, %c0_21] : memref<1x32xf32, #tpu.memory_space<vmem>>, vector<1x32xf32>
    %22 = vector.broadcast %21 : vector<1x32xf32> to vector<64x32xf32>
    %23 = arith.addf %20, %22 : vector<64x32xf32>
    %cst_22 = arith.constant 0.000000e+00 : f32
    %24 = vector.broadcast %cst_22 : f32 to vector<64x32xf32>
    %25 = arith.cmpf oge, %23, %24 : vector<64x32xf32>
    %cst_23 = arith.constant 0.00999999977 : f32
    %26 = vector.broadcast %cst_23 : f32 to vector<64x32xf32>
    %27 = arith.mulf %26, %23 : vector<64x32xf32>
    %28 = arith.select %25, %23, %27 : vector<64x32xi1>, vector<64x32xf32>
    %c0_24 = arith.constant 0 : index
    %c0_25 = arith.constant 0 : index
    %29 = vector.load %arg11[%c0_24, %c0_25] : memref<32x16xf32, #tpu.memory_space<vmem>>, vector<32x16xf32>
    %cst_26 = arith.constant dense<0.000000e+00> : vector<64x16xf32>
    %30 = tpu.matmul %28, %29, %cst_26 {dimension_numbers = #tpu.dot_dimension_numbers<[1], [0], [0], [1], [0, 0, 1, 1], [], []>} : vector<64x32xf32>, vector<32x16xf32>, vector<64x16xf32> -> vector<64x16xf32>
    %c0_27 = arith.constant 0 : index
    %c0_28 = arith.constant 0 : index
    %31 = vector.load %arg12[%c0_27, %c0_28] : memref<1x16xf32, #tpu.memory_space<vmem>>, vector<1x16xf32>
    %32 = vector.broadcast %31 : vector<1x16xf32> to vector<64x16xf32>
    %33 = arith.addf %30, %32 : vector<64x16xf32>
    %cst_29 = arith.constant 0.000000e+00 : f32
    %34 = vector.broadcast %cst_29 : f32 to vector<64x16xf32>
    %35 = arith.cmpf oge, %33, %34 : vector<64x16xf32>
    %cst_30 = arith.constant 0.00999999977 : f32
    %36 = vector.broadcast %cst_30 : f32 to vector<64x16xf32>
    %37 = arith.mulf %36, %33 : vector<64x16xf32>
    %38 = arith.select %35, %33, %37 : vector<64x16xi1>, vector<64x16xf32>
    %c0_31 = arith.constant 0 : index
    %c0_32 = arith.constant 0 : index
    %39 = vector.load %arg13[%c0_31, %c0_32] : memref<16x16xf32, #tpu.memory_space<vmem>>, vector<16x16xf32>
    %cst_33 = arith.constant dense<0.000000e+00> : vector<64x16xf32>
    %40 = tpu.matmul %38, %39, %cst_33 {dimension_numbers = #tpu.dot_dimension_numbers<[1], [0], [0], [1], [0, 0, 1, 1], [], []>} : vector<64x16xf32>, vector<16x16xf32>, vector<64x16xf32> -> vector<64x16xf32>
    %c0_34 = arith.constant 0 : index
    %c0_35 = arith.constant 0 : index
    %41 = vector.load %arg14[%c0_34, %c0_35] : memref<1x16xf32, #tpu.memory_space<vmem>>, vector<1x16xf32>
    %42 = vector.broadcast %41 : vector<1x16xf32> to vector<64x16xf32>
    %43 = arith.addf %40, %42 : vector<64x16xf32>
    %cst_36 = arith.constant 0.000000e+00 : f32
    %44 = vector.broadcast %cst_36 : f32 to vector<64x16xf32>
    %45 = arith.cmpf oge, %43, %44 : vector<64x16xf32>
    %cst_37 = arith.constant 0.00999999977 : f32
    %46 = vector.broadcast %cst_37 : f32 to vector<64x16xf32>
    %47 = arith.mulf %46, %43 : vector<64x16xf32>
    %48 = arith.select %45, %43, %47 : vector<64x16xi1>, vector<64x16xf32>
    %c0_38 = arith.constant 0 : index
    %c0_39 = arith.constant 0 : index
    %49 = vector.load %arg15[%c0_38, %c0_39] : memref<16x1xf32, #tpu.memory_space<vmem>>, vector<16x1xf32>
    %cst_40 = arith.constant dense<0.000000e+00> : vector<64x1xf32>
    %50 = tpu.matmul %48, %49, %cst_40 {dimension_numbers = #tpu.dot_dimension_numbers<[1], [0], [0], [1], [0, 0, 1, 1], [], []>} : vector<64x16xf32>, vector<16x1xf32>, vector<64x1xf32> -> vector<64x1xf32>
    %c0_41 = arith.constant 0 : index
    %c0_42 = arith.constant 0 : index
    %51 = vector.load %arg6[%c0_41, %c0_42] : memref<8x64xf32, #tpu.memory_space<vmem>>, vector<8x64xf32>
    %c0_43 = arith.constant 0 : index
    %c0_44 = arith.constant 0 : index
    %52 = vector.load %arg5[%c0_43, %c0_44] : memref<64x8xf32, #tpu.memory_space<vmem>>, vector<64x8xf32>
    %53 = vector.broadcast %50 : vector<64x1xf32> to vector<64x8xf32>
    %54 = arith.mulf %53, %52 : vector<64x8xf32>
    %cst_45 = arith.constant dense<0.000000e+00> : vector<8x8xf32>
    %55 = tpu.matmul %51, %54, %cst_45 {dimension_numbers = #tpu.dot_dimension_numbers<[1], [0], [0], [1], [0, 0, 1, 1], [], []>} : vector<8x64xf32>, vector<64x8xf32>, vector<8x8xf32> -> vector<8x8xf32>
    %c0_46 = arith.constant 0 : index
    %c0_47 = arith.constant 0 : index
    %56 = vector.load %arg16[%c0_46, %c0_47] : memref<1x1xf32, #tpu.memory_space<vmem>>, vector<1x1xf32>
    %57 = vector.broadcast %56 : vector<1x1xf32> to vector<8x8xf32>
    %58 = arith.addf %55, %57 : vector<8x8xf32>
    %59 = arith.mulf %58, %5 : vector<8x8xf32>
    %60 = tpu.iota {dimensions = array<i32: 0>} : vector<8x8xi32>
    %61 = tpu.iota {dimensions = array<i32: 1>} : vector<8x8xi32>
    %62 = arith.cmpi eq, %60, %61 : vector<8x8xi32>
    %63 = arith.extui %62 : vector<8x8xi1> to vector<8x8xi32>
    %64 = arith.sitofp %63 : vector<8x8xi32> to vector<8x8xf32>
    %cst_48 = arith.constant 1.000000e+08 : f32
    %65 = vector.broadcast %cst_48 : f32 to vector<8x8xf32>
    %66 = arith.mulf %64, %65 : vector<8x8xf32>
    %67 = arith.subf %59, %66 : vector<8x8xf32>
    %cst_49 = arith.constant dense<0xFF800000> : vector<8xf32>
    %68 = vector.multi_reduction <maximumf>, %67, %cst_49 [1] : vector<8x8xf32> to vector<8xf32>
    %69 = vector.shape_cast %68 : vector<8xf32> to vector<8x1xf32>
    %70 = vector.broadcast %69 : vector<8x1xf32> to vector<8x8xf32>
    %71 = arith.subf %67, %70 : vector<8x8xf32>
    %72 = math.exp %71 : vector<8x8xf32>
    %cst_50 = arith.constant dense<0.000000e+00> : vector<8xf32>
    %73 = vector.multi_reduction <add>, %72, %cst_50 [1] : vector<8x8xf32> to vector<8xf32>
    %74 = vector.shape_cast %73 : vector<8xf32> to vector<8x1xf32>
    %75 = tpu.reciprocal %74 {approx = true} : vector<8x1xf32> -> vector<8x1xf32>
    %76 = vector.broadcast %75 : vector<8x1xf32> to vector<8x8xf32>
    %77 = arith.mulf %72, %76 : vector<8x8xf32>
    %cst_51 = arith.constant dense<0.000000e+00> : vector<8x10xf32>
    %78 = tpu.matmul %77, %3, %cst_51 {dimension_numbers = #tpu.dot_dimension_numbers<[1], [0], [0], [1], [0, 0, 1, 1], [], []>} : vector<8x8xf32>, vector<8x10xf32>, vector<8x10xf32> -> vector<8x10xf32>
    %c0_52 = arith.constant 0 : index
    %c0_53 = arith.constant 0 : index
    %79 = vector.load %arg17[%c0_52, %c0_53] : memref<10x8xf32, #tpu.memory_space<vmem>>, vector<10x8xf32>
    %cst_54 = arith.constant dense<0.000000e+00> : vector<8x8xf32>
    %80 = tpu.matmul %3, %79, %cst_54 {dimension_numbers = #tpu.dot_dimension_numbers<[1], [0], [0], [1], [0, 0, 1, 1], [], []>} : vector<8x10xf32>, vector<10x8xf32>, vector<8x8xf32> -> vector<8x8xf32>
    %c0_55 = arith.constant 0 : index
    %c0_56 = arith.constant 0 : index
    %81 = vector.load %arg18[%c0_55, %c0_56] : memref<10x8xf32, #tpu.memory_space<vmem>>, vector<10x8xf32>
    %cst_57 = arith.constant dense<0.000000e+00> : vector<8x8xf32>
    %82 = tpu.matmul %78, %81, %cst_57 {dimension_numbers = #tpu.dot_dimension_numbers<[1], [0], [0], [1], [0, 0, 1, 1], [], []>} : vector<8x10xf32>, vector<10x8xf32>, vector<8x8xf32> -> vector<8x8xf32>
    %83 = arith.addf %80, %82 : vector<8x8xf32>
    %c0_58 = arith.constant 0 : index
    %c0_59 = arith.constant 0 : index
    %84 = vector.load %arg19[%c0_58, %c0_59] : memref<1x8xf32, #tpu.memory_space<vmem>>, vector<1x8xf32>
    %85 = vector.broadcast %84 : vector<1x8xf32> to vector<8x8xf32>
    %86 = arith.addf %83, %85 : vector<8x8xf32>
    %cst_60 = arith.constant 0.000000e+00 : f32
    %87 = vector.broadcast %cst_60 : f32 to vector<8x8xf32>
    %88 = arith.cmpf oge, %86, %87 : vector<8x8xf32>
    %cst_61 = arith.constant 0.00999999977 : f32
    %89 = vector.broadcast %cst_61 : f32 to vector<8x8xf32>
    %90 = arith.mulf %89, %86 : vector<8x8xf32>
    %91 = arith.select %88, %86, %90 : vector<8x8xi1>, vector<8x8xf32>
    %c0_62 = arith.constant 0 : index
    %c0_63 = arith.constant 0 : index
    %c0_64 = arith.constant 0 : index
    %92 = vector.load %arg20[%c0_62, %c0_63, %c0_64] : memref<1x8x8xf32, #tpu.memory_space<vmem>>, vector<1x8x8xf32>
    %93 = vector.shape_cast %92 : vector<1x8x8xf32> to vector<8x8xf32>
    %94 = vector.shape_cast %91 : vector<8x8xf32> to vector<1x8x8xf32>
    tpu.vector_store %arg20[%c0_62, %c0_63, %c0_64], %94 {strides = array<i32>} : memref<1x8x8xf32, #tpu.memory_space<vmem>>, vector<1x8x8xf32>,
    return
  }
  func.func @transform_0(%arg0: i32) -> (i32, i32, i32) {
    %c0_i32 = arith.constant 0 : i32
    %c0_i32_0 = arith.constant 0 : i32
    %c0_i32_1 = arith.constant 0 : i32
    return %arg0, %c0_i32, %c0_i32_0 : i32, i32, i32
  }
  func.func @transform_1(%arg0: i32) -> (i32, i32, i32) {
    %c0_i32 = arith.constant 0 : i32
    %c0_i32_0 = arith.constant 0 : i32
    %c0_i32_1 = arith.constant 0 : i32
    return %arg0, %c0_i32, %c0_i32_0 : i32, i32, i32
  }
  func.func @transform_2(%arg0: i32) -> (i32, i32, i32) {
    %c0_i32 = arith.constant 0 : i32
    %c0_i32_0 = arith.constant 0 : i32
    %c0_i32_1 = arith.constant 0 : i32
    return %arg0, %c0_i32, %c0_i32_0 : i32, i32, i32
  }
  func.func @transform_3(%arg0: i32) -> (i32, i32) {
    %c0_i32 = arith.constant 0 : i32
    %c0_i32_0 = arith.constant 0 : i32
    %c0_i32_1 = arith.constant 0 : i32
    return %c0_i32, %c0_i32_0 : i32, i32
  }
  func.func @transform_4(%arg0: i32) -> (i32, i32) {
    %c0_i32 = arith.constant 0 : i32
    %c0_i32_0 = arith.constant 0 : i32
    %c0_i32_1 = arith.constant 0 : i32
    return %c0_i32, %c0_i32_0 : i32, i32
  }
  func.func @transform_5(%arg0: i32) -> (i32, i32) {
    %c0_i32 = arith.constant 0 : i32
    %c0_i32_0 = arith.constant 0 : i32
    %c0_i32_1 = arith.constant 0 : i32
    return %c0_i32, %c0_i32_0 : i32, i32
  }
  func.func @transform_6(%arg0: i32) -> (i32, i32) {
    %c0_i32 = arith.constant 0 : i32
    %c0_i32_0 = arith.constant 0 : i32
    %c0_i32_1 = arith.constant 0 : i32
    return %c0_i32, %c0_i32_0 : i32, i32
  }
  func.func @transform_7(%arg0: i32) -> (i32, i32) {
    %c0_i32 = arith.constant 0 : i32
    %c0_i32_0 = arith.constant 0 : i32
    %c0_i32_1 = arith.constant 0 : i32
    return %c0_i32, %c0_i32_0 : i32, i32
  }
  func.func @transform_8(%arg0: i32) -> (i32, i32) {
    %c0_i32 = arith.constant 0 : i32
    %c0_i32_0 = arith.constant 0 : i32
    %c0_i32_1 = arith.constant 0 : i32
    return %c0_i32, %c0_i32_0 : i32, i32
  }
  func.func @transform_9(%arg0: i32) -> (i32, i32) {
    %c0_i32 = arith.constant 0 : i32
    %c0_i32_0 = arith.constant 0 : i32
    %c0_i32_1 = arith.constant 0 : i32
    return %c0_i32, %c0_i32_0 : i32, i32
  }
  func.func @transform_10(%arg0: i32) -> (i32, i32) {
    %c0_i32 = arith.constant 0 : i32
    %c0_i32_0 = arith.constant 0 : i32
    %c0_i32_1 = arith.constant 0 : i32
    return %c0_i32, %c0_i32_0 : i32, i32
  }
  func.func @transform_11(%arg0: i32) -> (i32, i32) {
    %c0_i32 = arith.constant 0 : i32
    %c0_i32_0 = arith.constant 0 : i32
    %c0_i32_1 = arith.constant 0 : i32
    return %c0_i32, %c0_i32_0 : i32, i32
  }
  func.func @transform_12(%arg0: i32) -> (i32, i32) {
    %c0_i32 = arith.constant 0 : i32
    %c0_i32_0 = arith.constant 0 : i32
    %c0_i32_1 = arith.constant 0 : i32
    return %c0_i32, %c0_i32_0 : i32, i32
  }
  func.func @transform_13(%arg0: i32) -> (i32, i32) {
    %c0_i32 = arith.constant 0 : i32
    %c0_i32_0 = arith.constant 0 : i32
    %c0_i32_1 = arith.constant 0 : i32
    return %c0_i32, %c0_i32_0 : i32, i32
  }
  func.func @transform_14(%arg0: i32) -> (i32, i32) {
    %c0_i32 = arith.constant 0 : i32
    %c0_i32_0 = arith.constant 0 : i32
    %c0_i32_1 = arith.constant 0 : i32
    return %c0_i32, %c0_i32_0 : i32, i32
  }
  func.func @transform_15(%arg0: i32) -> (i32, i32) {
    %c0_i32 = arith.constant 0 : i32
    %c0_i32_0 = arith.constant 0 : i32
    %c0_i32_1 = arith.constant 0 : i32
    return %c0_i32, %c0_i32_0 : i32, i32
  }
  func.func @transform_16(%arg0: i32) -> (i32, i32) {
    %c0_i32 = arith.constant 0 : i32
    %c0_i32_0 = arith.constant 0 : i32
    %c0_i32_1 = arith.constant 0 : i32
    return %c0_i32, %c0_i32_0 : i32, i32
  }
  func.func @transform_17(%arg0: i32) -> (i32, i32) {
    %c0_i32 = arith.constant 0 : i32
    %c0_i32_0 = arith.constant 0 : i32
    %c0_i32_1 = arith.constant 0 : i32
    return %c0_i32, %c0_i32_0 : i32, i32
  }
  func.func @transform_18(%arg0: i32) -> (i32, i32) {
    %c0_i32 = arith.constant 0 : i32
    %c0_i32_0 = arith.constant 0 : i32
    %c0_i32_1 = arith.constant 0 : i32
    return %c0_i32, %c0_i32_0 : i32, i32
  }
  func.func @transform_19(%arg0: i32) -> (i32, i32, i32) {
    %c0_i32 = arith.constant 0 : i32
    %c0_i32_0 = arith.constant 0 : i32
    %c0_i32_1 = arith.constant 0 : i32
    return %arg0, %c0_i32, %c0_i32_0 : i32, i32, i32
  }
}

module attributes {stable_mosaic.version = 11 : i64} {
  func.func @fused_last_kernel(%arg0: i32, %arg1: memref<1x8x8xf32, #tpu.memory_space<vmem>>, %arg2: memref<1x8x18xf32, #tpu.memory_space<vmem>>, %arg3: memref<1x8x1xf32, #tpu.memory_space<vmem>>, %arg4: memref<8x32xf32, #tpu.memory_space<vmem>>, %arg5: memref<1x32xf32, #tpu.memory_space<vmem>>, %arg6: memref<32x32xf32, #tpu.memory_space<vmem>>, %arg7: memref<1x32xf32, #tpu.memory_space<vmem>>, %arg8: memref<32x16xf32, #tpu.memory_space<vmem>>, %arg9: memref<1x16xf32, #tpu.memory_space<vmem>>, %arg10: memref<16x16xf32, #tpu.memory_space<vmem>>, %arg11: memref<1x16xf32, #tpu.memory_space<vmem>>, %arg12: memref<16x1xf32, #tpu.memory_space<vmem>>, %arg13: memref<1x1xf32, #tpu.memory_space<vmem>>, %arg14: memref<18x4xf32, #tpu.memory_space<vmem>>, %arg15: memref<18x4xf32, #tpu.memory_space<vmem>>, %arg16: memref<1x4xf32, #tpu.memory_space<vmem>>, %arg17: memref<1x1x4xf32, #tpu.memory_space<vmem>>) attributes {dimension_semantics = [#tpu.dimension_semantics<parallel>], iteration_bounds = array<i64: 2>, scalar_prefetch = 0 : i64, scratch_operands = 0 : i64, tpu.core_type = #tpu.core_type<tc>, window_params = [{transform_indices = @transform_0, window_bounds = array<i64: 1, 8, 8>}, {transform_indices = @transform_1, window_bounds = array<i64: 1, 8, 18>}, {transform_indices = @transform_2, window_bounds = array<i64: 1, 8, 1>}, {pipeline_mode = #tpu.pipeline_mode<synchronous>, transform_indices = @transform_3, window_bounds = array<i64: 8, 32>}, {pipeline_mode = #tpu.pipeline_mode<synchronous>, transform_indices = @transform_4, window_bounds = array<i64: 1, 32>}, {pipeline_mode = #tpu.pipeline_mode<synchronous>, transform_indices = @transform_5, window_bounds = array<i64: 32, 32>}, {pipeline_mode = #tpu.pipeline_mode<synchronous>, transform_indices = @transform_6, window_bounds = array<i64: 1, 32>}, {pipeline_mode = #tpu.pipeline_mode<synchronous>, transform_indices = @transform_7, window_bounds = array<i64: 32, 16>}, {pipeline_mode = #tpu.pipeline_mode<synchronous>, transform_indices = @transform_8, window_bounds = array<i64: 1, 16>}, {pipeline_mode = #tpu.pipeline_mode<synchronous>, transform_indices = @transform_9, window_bounds = array<i64: 16, 16>}, {pipeline_mode = #tpu.pipeline_mode<synchronous>, transform_indices = @transform_10, window_bounds = array<i64: 1, 16>}, {pipeline_mode = #tpu.pipeline_mode<synchronous>, transform_indices = @transform_11, window_bounds = array<i64: 16, 1>}, {pipeline_mode = #tpu.pipeline_mode<synchronous>, transform_indices = @transform_12, window_bounds = array<i64: 1, 1>}, {pipeline_mode = #tpu.pipeline_mode<synchronous>, transform_indices = @transform_13, window_bounds = array<i64: 18, 4>}, {pipeline_mode = #tpu.pipeline_mode<synchronous>, transform_indices = @transform_14, window_bounds = array<i64: 18, 4>}, {pipeline_mode = #tpu.pipeline_mode<synchronous>, transform_indices = @transform_15, window_bounds = array<i64: 1, 4>}, {transform_indices = @transform_16, window_bounds = array<i64: 1, 1, 4>}]} {
    %c0 = arith.constant 0 : index
    %c0_0 = arith.constant 0 : index
    %c0_1 = arith.constant 0 : index
    %0 = vector.load %arg1[%c0, %c0_0, %c0_1] : memref<1x8x8xf32, #tpu.memory_space<vmem>>, vector<1x8x8xf32>
    %1 = vector.shape_cast %0 : vector<1x8x8xf32> to vector<8x8xf32>
    %c0_2 = arith.constant 0 : index
    %c0_3 = arith.constant 0 : index
    %c0_4 = arith.constant 0 : index
    %2 = vector.load %arg2[%c0_2, %c0_3, %c0_4] : memref<1x8x18xf32, #tpu.memory_space<vmem>>, vector<1x8x18xf32>
    %3 = vector.shape_cast %2 : vector<1x8x18xf32> to vector<8x18xf32>
    %c0_5 = arith.constant 0 : index
    %c0_6 = arith.constant 0 : index
    %c0_7 = arith.constant 0 : index
    %4 = vector.load %arg3[%c0_5, %c0_6, %c0_7] : memref<1x8x1xf32, #tpu.memory_space<vmem>>, vector<1x8x1xf32>
    %5 = vector.shape_cast %4 : vector<1x8x1xf32> to vector<8x1xf32>
    %6 = vector.extract_strided_slice %1 {offsets = [0, 0], sizes = [1, 8], strides = [1, 1]} : vector<8x8xf32> to vector<1x8xf32>
    %7 = vector.broadcast %6 : vector<1x8xf32> to vector<8x8xf32>
    %8 = arith.subf %1, %7 : vector<8x8xf32>
    %9 = math.absf %8 : vector<8x8xf32>
    %c0_8 = arith.constant 0 : index
    %c0_9 = arith.constant 0 : index
    %10 = vector.load %arg4[%c0_8, %c0_9] : memref<8x32xf32, #tpu.memory_space<vmem>>, vector<8x32xf32>
    %cst = arith.constant dense<0.000000e+00> : vector<8x32xf32>
    %11 = tpu.matmul %9, %10, %cst {dimension_numbers = #tpu.dot_dimension_numbers<[1], [0], [0], [1], [0, 0, 1, 1], [], []>} : vector<8x8xf32>, vector<8x32xf32>, vector<8x32xf32> -> vector<8x32xf32>
    %c0_10 = arith.constant 0 : index
    %c0_11 = arith.constant 0 : index
    %12 = vector.load %arg5[%c0_10, %c0_11] : memref<1x32xf32, #tpu.memory_space<vmem>>, vector<1x32xf32>
    %13 = vector.broadcast %12 : vector<1x32xf32> to vector<8x32xf32>
    %14 = arith.addf %11, %13 : vector<8x32xf32>
    %cst_12 = arith.constant 0.000000e+00 : f32
    %15 = vector.broadcast %cst_12 : f32 to vector<8x32xf32>
    %16 = arith.cmpf oge, %14, %15 : vector<8x32xf32>
    %cst_13 = arith.constant 0.00999999977 : f32
    %17 = vector.broadcast %cst_13 : f32 to vector<8x32xf32>
    %18 = arith.mulf %17, %14 : vector<8x32xf32>
    %19 = arith.select %16, %14, %18 : vector<8x32xi1>, vector<8x32xf32>
    %c0_14 = arith.constant 0 : index
    %c0_15 = arith.constant 0 : index
    %20 = vector.load %arg6[%c0_14, %c0_15] : memref<32x32xf32, #tpu.memory_space<vmem>>, vector<32x32xf32>
    %cst_16 = arith.constant dense<0.000000e+00> : vector<8x32xf32>
    %21 = tpu.matmul %19, %20, %cst_16 {dimension_numbers = #tpu.dot_dimension_numbers<[1], [0], [0], [1], [0, 0, 1, 1], [], []>} : vector<8x32xf32>, vector<32x32xf32>, vector<8x32xf32> -> vector<8x32xf32>
    %c0_17 = arith.constant 0 : index
    %c0_18 = arith.constant 0 : index
    %22 = vector.load %arg7[%c0_17, %c0_18] : memref<1x32xf32, #tpu.memory_space<vmem>>, vector<1x32xf32>
    %23 = vector.broadcast %22 : vector<1x32xf32> to vector<8x32xf32>
    %24 = arith.addf %21, %23 : vector<8x32xf32>
    %cst_19 = arith.constant 0.000000e+00 : f32
    %25 = vector.broadcast %cst_19 : f32 to vector<8x32xf32>
    %26 = arith.cmpf oge, %24, %25 : vector<8x32xf32>
    %cst_20 = arith.constant 0.00999999977 : f32
    %27 = vector.broadcast %cst_20 : f32 to vector<8x32xf32>
    %28 = arith.mulf %27, %24 : vector<8x32xf32>
    %29 = arith.select %26, %24, %28 : vector<8x32xi1>, vector<8x32xf32>
    %c0_21 = arith.constant 0 : index
    %c0_22 = arith.constant 0 : index
    %30 = vector.load %arg8[%c0_21, %c0_22] : memref<32x16xf32, #tpu.memory_space<vmem>>, vector<32x16xf32>
    %cst_23 = arith.constant dense<0.000000e+00> : vector<8x16xf32>
    %31 = tpu.matmul %29, %30, %cst_23 {dimension_numbers = #tpu.dot_dimension_numbers<[1], [0], [0], [1], [0, 0, 1, 1], [], []>} : vector<8x32xf32>, vector<32x16xf32>, vector<8x16xf32> -> vector<8x16xf32>
    %c0_24 = arith.constant 0 : index
    %c0_25 = arith.constant 0 : index
    %32 = vector.load %arg9[%c0_24, %c0_25] : memref<1x16xf32, #tpu.memory_space<vmem>>, vector<1x16xf32>
    %33 = vector.broadcast %32 : vector<1x16xf32> to vector<8x16xf32>
    %34 = arith.addf %31, %33 : vector<8x16xf32>
    %cst_26 = arith.constant 0.000000e+00 : f32
    %35 = vector.broadcast %cst_26 : f32 to vector<8x16xf32>
    %36 = arith.cmpf oge, %34, %35 : vector<8x16xf32>
    %cst_27 = arith.constant 0.00999999977 : f32
    %37 = vector.broadcast %cst_27 : f32 to vector<8x16xf32>
    %38 = arith.mulf %37, %34 : vector<8x16xf32>
    %39 = arith.select %36, %34, %38 : vector<8x16xi1>, vector<8x16xf32>
    %c0_28 = arith.constant 0 : index
    %c0_29 = arith.constant 0 : index
    %40 = vector.load %arg10[%c0_28, %c0_29] : memref<16x16xf32, #tpu.memory_space<vmem>>, vector<16x16xf32>
    %cst_30 = arith.constant dense<0.000000e+00> : vector<8x16xf32>
    %41 = tpu.matmul %39, %40, %cst_30 {dimension_numbers = #tpu.dot_dimension_numbers<[1], [0], [0], [1], [0, 0, 1, 1], [], []>} : vector<8x16xf32>, vector<16x16xf32>, vector<8x16xf32> -> vector<8x16xf32>
    %c0_31 = arith.constant 0 : index
    %c0_32 = arith.constant 0 : index
    %42 = vector.load %arg11[%c0_31, %c0_32] : memref<1x16xf32, #tpu.memory_space<vmem>>, vector<1x16xf32>
    %43 = vector.broadcast %42 : vector<1x16xf32> to vector<8x16xf32>
    %44 = arith.addf %41, %43 : vector<8x16xf32>
    %cst_33 = arith.constant 0.000000e+00 : f32
    %45 = vector.broadcast %cst_33 : f32 to vector<8x16xf32>
    %46 = arith.cmpf oge, %44, %45 : vector<8x16xf32>
    %cst_34 = arith.constant 0.00999999977 : f32
    %47 = vector.broadcast %cst_34 : f32 to vector<8x16xf32>
    %48 = arith.mulf %47, %44 : vector<8x16xf32>
    %49 = arith.select %46, %44, %48 : vector<8x16xi1>, vector<8x16xf32>
    %c0_35 = arith.constant 0 : index
    %c0_36 = arith.constant 0 : index
    %50 = vector.load %arg12[%c0_35, %c0_36] : memref<16x1xf32, #tpu.memory_space<vmem>>, vector<16x1xf32>
    %cst_37 = arith.constant dense<0.000000e+00> : vector<8x1xf32>
    %51 = tpu.matmul %49, %50, %cst_37 {dimension_numbers = #tpu.dot_dimension_numbers<[1], [0], [0], [1], [0, 0, 1, 1], [], []>} : vector<8x16xf32>, vector<16x1xf32>, vector<8x1xf32> -> vector<8x1xf32>
    %c0_38 = arith.constant 0 : index
    %c0_39 = arith.constant 0 : index
    %52 = vector.load %arg13[%c0_38, %c0_39] : memref<1x1xf32, #tpu.memory_space<vmem>>, vector<1x1xf32>
    %53 = vector.broadcast %52 : vector<1x1xf32> to vector<8x1xf32>
    %54 = arith.addf %51, %53 : vector<8x1xf32>
    %55 = arith.mulf %54, %5 : vector<8x1xf32>
    %56 = tpu.iota {dimensions = array<i32: 0>} : vector<8x1xi32>
    %c0_i32 = arith.constant 0 : i32
    %57 = vector.broadcast %c0_i32 : i32 to vector<8x1xi32>
    %58 = arith.cmpi eq, %56, %57 : vector<8x1xi32>
    %59 = arith.extui %58 : vector<8x1xi1> to vector<8x1xi32>
    %60 = arith.sitofp %59 : vector<8x1xi32> to vector<8x1xf32>
    %cst_40 = arith.constant 1.000000e+08 : f32
    %61 = vector.broadcast %cst_40 : f32 to vector<8x1xf32>
    %62 = arith.mulf %60, %61 : vector<8x1xf32>
    %63 = arith.subf %55, %62 : vector<8x1xf32>
    %cst_41 = arith.constant dense<0xFF800000> : vector<1xf32>
    %64 = vector.multi_reduction <maximumf>, %63, %cst_41 [0] : vector<8x1xf32> to vector<1xf32>
    %65 = vector.shape_cast %64 : vector<1xf32> to vector<1x1xf32>
    %66 = vector.broadcast %65 : vector<1x1xf32> to vector<8x1xf32>
    %67 = arith.subf %63, %66 : vector<8x1xf32>
    %68 = math.exp %67 : vector<8x1xf32>
    %cst_42 = arith.constant dense<0.000000e+00> : vector<1xf32>
    %69 = vector.multi_reduction <add>, %68, %cst_42 [0] : vector<8x1xf32> to vector<1xf32>
    %70 = vector.shape_cast %69 : vector<1xf32> to vector<1x1xf32>
    %71 = tpu.reciprocal %70 {approx = true} : vector<1x1xf32> -> vector<1x1xf32>
    %72 = vector.broadcast %71 : vector<1x1xf32> to vector<8x1xf32>
    %73 = arith.mulf %68, %72 : vector<8x1xf32>
    %74 = vector.broadcast %73 : vector<8x1xf32> to vector<8x18xf32>
    %75 = arith.mulf %74, %3 : vector<8x18xf32>
    %cst_43 = arith.constant dense<0.000000e+00> : vector<18xf32>
    %76 = vector.multi_reduction <add>, %75, %cst_43 [0] : vector<8x18xf32> to vector<18xf32>
    %77 = vector.shape_cast %76 : vector<18xf32> to vector<1x18xf32>
    %78 = vector.extract_strided_slice %3 {offsets = [0, 0], sizes = [1, 18], strides = [1, 1]} : vector<8x18xf32> to vector<1x18xf32>
    %c0_44 = arith.constant 0 : index
    %c0_45 = arith.constant 0 : index
    %79 = vector.load %arg14[%c0_44, %c0_45] : memref<18x4xf32, #tpu.memory_space<vmem>>, vector<18x4xf32>
    %cst_46 = arith.constant dense<0.000000e+00> : vector<1x4xf32>
    %80 = tpu.matmul %78, %79, %cst_46 {dimension_numbers = #tpu.dot_dimension_numbers<[1], [0], [0], [1], [0, 0, 1, 1], [], []>} : vector<1x18xf32>, vector<18x4xf32>, vector<1x4xf32> -> vector<1x4xf32>
    %c0_47 = arith.constant 0 : index
    %c0_48 = arith.constant 0 : index
    %81 = vector.load %arg15[%c0_47, %c0_48] : memref<18x4xf32, #tpu.memory_space<vmem>>, vector<18x4xf32>
    %cst_49 = arith.constant dense<0.000000e+00> : vector<1x4xf32>
    %82 = tpu.matmul %77, %81, %cst_49 {dimension_numbers = #tpu.dot_dimension_numbers<[1], [0], [0], [1], [0, 0, 1, 1], [], []>} : vector<1x18xf32>, vector<18x4xf32>, vector<1x4xf32> -> vector<1x4xf32>
    %83 = arith.addf %80, %82 : vector<1x4xf32>
    %c0_50 = arith.constant 0 : index
    %c0_51 = arith.constant 0 : index
    %84 = vector.load %arg16[%c0_50, %c0_51] : memref<1x4xf32, #tpu.memory_space<vmem>>, vector<1x4xf32>
    %85 = arith.addf %83, %84 : vector<1x4xf32>
    %c0_52 = arith.constant 0 : index
    %c0_53 = arith.constant 0 : index
    %c0_54 = arith.constant 0 : index
    %86 = vector.load %arg17[%c0_52, %c0_53, %c0_54] : memref<1x1x4xf32, #tpu.memory_space<vmem>>, vector<1x1x4xf32>
    %87 = vector.shape_cast %86 : vector<1x1x4xf32> to vector<1x4xf32>
    %88 = vector.shape_cast %85 : vector<1x4xf32> to vector<1x1x4xf32>
    tpu.vector_store %arg17[%c0_52, %c0_53, %c0_54], %88 {strides = array<i32>} : memref<1x1x4xf32, #tpu.memory_space<vmem>>, vector<1x1x4xf32>,
    return
  }
  func.func @transform_0(%arg0: i32) -> (i32, i32, i32) {
    %c0_i32 = arith.constant 0 : i32
    %c0_i32_0 = arith.constant 0 : i32
    %c0_i32_1 = arith.constant 0 : i32
    return %arg0, %c0_i32, %c0_i32_0 : i32, i32, i32
  }
  func.func @transform_1(%arg0: i32) -> (i32, i32, i32) {
    %c0_i32 = arith.constant 0 : i32
    %c0_i32_0 = arith.constant 0 : i32
    %c0_i32_1 = arith.constant 0 : i32
    return %arg0, %c0_i32, %c0_i32_0 : i32, i32, i32
  }
  func.func @transform_2(%arg0: i32) -> (i32, i32, i32) {
    %c0_i32 = arith.constant 0 : i32
    %c0_i32_0 = arith.constant 0 : i32
    %c0_i32_1 = arith.constant 0 : i32
    return %arg0, %c0_i32, %c0_i32_0 : i32, i32, i32
  }
  func.func @transform_3(%arg0: i32) -> (i32, i32) {
    %c0_i32 = arith.constant 0 : i32
    %c0_i32_0 = arith.constant 0 : i32
    %c0_i32_1 = arith.constant 0 : i32
    return %c0_i32, %c0_i32_0 : i32, i32
  }
  func.func @transform_4(%arg0: i32) -> (i32, i32) {
    %c0_i32 = arith.constant 0 : i32
    %c0_i32_0 = arith.constant 0 : i32
    %c0_i32_1 = arith.constant 0 : i32
    return %c0_i32, %c0_i32_0 : i32, i32
  }
  func.func @transform_5(%arg0: i32) -> (i32, i32) {
    %c0_i32 = arith.constant 0 : i32
    %c0_i32_0 = arith.constant 0 : i32
    %c0_i32_1 = arith.constant 0 : i32
    return %c0_i32, %c0_i32_0 : i32, i32
  }
  func.func @transform_6(%arg0: i32) -> (i32, i32) {
    %c0_i32 = arith.constant 0 : i32
    %c0_i32_0 = arith.constant 0 : i32
    %c0_i32_1 = arith.constant 0 : i32
    return %c0_i32, %c0_i32_0 : i32, i32
  }
  func.func @transform_7(%arg0: i32) -> (i32, i32) {
    %c0_i32 = arith.constant 0 : i32
    %c0_i32_0 = arith.constant 0 : i32
    %c0_i32_1 = arith.constant 0 : i32
    return %c0_i32, %c0_i32_0 : i32, i32
  }
  func.func @transform_8(%arg0: i32) -> (i32, i32) {
    %c0_i32 = arith.constant 0 : i32
    %c0_i32_0 = arith.constant 0 : i32
    %c0_i32_1 = arith.constant 0 : i32
    return %c0_i32, %c0_i32_0 : i32, i32
  }
  func.func @transform_9(%arg0: i32) -> (i32, i32) {
    %c0_i32 = arith.constant 0 : i32
    %c0_i32_0 = arith.constant 0 : i32
    %c0_i32_1 = arith.constant 0 : i32
    return %c0_i32, %c0_i32_0 : i32, i32
  }
  func.func @transform_10(%arg0: i32) -> (i32, i32) {
    %c0_i32 = arith.constant 0 : i32
    %c0_i32_0 = arith.constant 0 : i32
    %c0_i32_1 = arith.constant 0 : i32
    return %c0_i32, %c0_i32_0 : i32, i32
  }
  func.func @transform_11(%arg0: i32) -> (i32, i32) {
    %c0_i32 = arith.constant 0 : i32
    %c0_i32_0 = arith.constant 0 : i32
    %c0_i32_1 = arith.constant 0 : i32
    return %c0_i32, %c0_i32_0 : i32, i32
  }
  func.func @transform_12(%arg0: i32) -> (i32, i32) {
    %c0_i32 = arith.constant 0 : i32
    %c0_i32_0 = arith.constant 0 : i32
    %c0_i32_1 = arith.constant 0 : i32
    return %c0_i32, %c0_i32_0 : i32, i32
  }
  func.func @transform_13(%arg0: i32) -> (i32, i32) {
    %c0_i32 = arith.constant 0 : i32
    %c0_i32_0 = arith.constant 0 : i32
    %c0_i32_1 = arith.constant 0 : i32
    return %c0_i32, %c0_i32_0 : i32, i32
  }
  func.func @transform_14(%arg0: i32) -> (i32, i32) {
    %c0_i32 = arith.constant 0 : i32
    %c0_i32_0 = arith.constant 0 : i32
    %c0_i32_1 = arith.constant 0 : i32
    return %c0_i32, %c0_i32_0 : i32, i32
  }
  func.func @transform_15(%arg0: i32) -> (i32, i32) {
    %c0_i32 = arith.constant 0 : i32
    %c0_i32_0 = arith.constant 0 : i32
    %c0_i32_1 = arith.constant 0 : i32
    return %c0_i32, %c0_i32_0 : i32, i32
  }
  func.func @transform_16(%arg0: i32) -> (i32, i32, i32) {
    %c0_i32 = arith.constant 0 : i32
    %c0_i32_0 = arith.constant 0 : i32
    %c0_i32_1 = arith.constant 0 : i32
    return %arg0, %c0_i32, %c0_i32_0 : i32, i32, i32
  }
}

</mosaic_0001>

<bundles_post_ra>
// kernel: gnn_forward.3
= control target key start
LH: loop header
LB: loop body
LE: loop exit
PB: predicated region body
PF: predicated region fallthrough
CT: control target
= control target key end

     0   :  { %s1812_s0 = inlined_call_operand.vmem [shape: f32[2,8,8], index: 0, kind: input, shape index: {}]   ;;  %s1813_s1 = inlined_call_operand.vmem [shape: f32[2,8,18], index: 1, kind: input, shape index: {}]   ;;  %s1814_s2 = inlined_call_operand.vmem [shape: f32[2,8,1], index: 2, kind: input, shape index: {}]   ;;  %s1815_s3 = inlined_call_operand.vmem [shape: f32[8,32], index: 3, kind: input, shape index: {}]   ;;  %s1816_s4 = inlined_call_operand.vmem [shape: f32[1,32], index: 4, kind: input, shape index: {}]   ;;  %s1817_s5 = inlined_call_operand.vmem [shape: f32[32,32], index: 5, kind: input, shape index: {}]   ;;  %s1818_s6 = inlined_call_operand.vmem [shape: f32[1,32], index: 6, kind: input, shape index: {}]   ;;  %s1819_s7 = inlined_call_operand.vmem [shape: f32[32,16], index: 7, kind: input, shape index: {}]   ;;  %s1820_s8 = inlined_call_operand.vmem [shape: f32[1,16], index: 8, kind: input, shape index: {}]   ;;  %s1821_s9 = inlined_call_operand.vmem [shape: f32[16,16], index: 9, kind: input, shape index: {}]   ;;  %s1822_s10 = inlined_call_operand.vmem [shape: f32[1,16], index: 10, kind: input, shape index: {}]   ;;  %s1823_s11 = inlined_call_operand.vmem [shape: f32[16,1], index: 11, kind: input, shape index: {}]   ;;  %s1824_s12 = inlined_call_operand.<no memory space> [shape: f32[1,1], index: 12, kind: input, shape index: {}]   ;;  %s1825_s13 = inlined_call_operand.vmem [shape: f32[18,4], index: 13, kind: input, shape index: {}]   ;;  %s1826_s14 = inlined_call_operand.vmem [shape: f32[18,4], index: 14, kind: input, shape index: {}]   ;;  %s1827_s15 = inlined_call_operand.vmem [shape: f32[1,4], index: 15, kind: input, shape index: {}]   ;;  %s1828_s16 = inlined_call_operand.hbm [shape: f32[2,1,4], index: 16, kind: output, shape index: {}]  }
   0x1   :  { %1829 = sst [smem:[#allocation7_spill]] %s1812_s0  ;;  %v21_v0 = vstv %s1824_s12 }
   0x2   :  { %1830 = sst [smem:[#allocation8_spill]] %s1813_s1  ;;  %22 = vst [vmem:[#allocation2] sm:$0x1] %v21_v0 }
   0x3   :  { %1831 = sst [smem:[#allocation9_spill]] %s1814_s2 }
   0x4   :  { %1832 = sst [smem:[#allocation10_spill]] %s1815_s3 }
   0x5   :  { %1833 = sst [smem:[#allocation11_spill]] %s1816_s4 }
   0x6   :  { %23 = vsyncpa [#allocation4], 0 }
   0x7   :  { %25 = vsyncpa [#allocation4 + $0x1], 0  ;;  %s1597_s23 = smov 0   ;;  %s1599_s24 = smov 0  }
   0x8   :  { %s1601_s25 = smov 0   ;;  %s1603_s26 = smov 0  }
   0x9 LB: > { %s1618_s12 = sadd.s32 4294967295, %s1503_s26   ;;  %s1286_s27 = sadd.s32 4294967294, %s1503_s26   ;;  %s1503_s26 = sphi %s1603_s26, %s1846_s26   ;;  %s1499_s25 = sphi %s1601_s25, %s1845_s25   ;;  %s1495_s24 = sphi %s1599_s24, %s1844_s24   ;;  %s1491_s23 = sphi %s1597_s23, %s1843_s23  }
   0xa   : > { %s1622_s28 = sadd.s32 1, %s1503_s26   ;;  %s389_s29 = sadd.s32 1, %s1499_s25 }
   0xb   : > { %s386_s30 = ssub.s32 %s1503_s26, %s1622_s28  ;;  %p399_p0 = scmp.ne.s32.totalorder %s1499_s25, %s1495_s24 }
   0xc   : > { %p387_p1 = scmp.eq.s32.totalorder %s386_s30, 0  ;;  %p400_p2 = scmp.eq.s32.totalorder %s1618_s12, 1 }
   0xd   : > { %p405_p3 = scmp.ne.s32.totalorder %s1495_s24, %s1491_s23  ;;  %p406_p4 = scmp.eq.s32.totalorder %s1286_s27, 1 }
   0xe   : > { %s1633_s0 = scalar_select %p387_p1, %s1499_s25, %s389_s29  }
   0xf   : > { %p1635_p5 = por %p400_p2, %p399_p0  ;;  %p1639_p6 = por %p406_p4, %p405_p3 }
  0x10   : > { %1834 = sst [smem:[#allocation6_spill]] %s1633_s0  ;;  %p1289_p7 = scmp.ge.s32.totalorder %s1503_s26, 1 }
  0x11   : > { %p484_p8 = scmp.lt.s32.totalorder %s1503_s26, 3 }
  0x13   : > { %p485_p9 = pnand %p1289_p7, %p484_p8 }
  0x14   : > { %s1837_s3 = sld [smem:[#allocation10_spill]] (!%p485_p9)  ;;  %p540_p10 = scmp.lt.s32.totalorder (!%p485_p9), %s1618_s12, 1 }
  0x15   : > { %488 = sbr.rel (%p485_p9) target bundleno = 1438 (0x59e), region = 84  ;;  %s1838_s20 = sld [smem:[#allocation7_spill]] (!%p485_p9) }
  0x16   : > { %s1839_s4 = sld [smem:[#allocation11_spill]] (!%p485_p9) }
  0x17   : > { %s1840_s2 = sld [smem:[#allocation9_spill]] (!%p485_p9) }
  0x18   : > { %s1841_s1 = sld [smem:[#allocation8_spill]] (!%p485_p9) }
  0x1a   : > { %v561_v1 = vld [vmem:[%s1837_s3] sm:$0xff]  ;;  %v555_v2 = vlaneseq  ;;  %v649_v3 = vld [vmem:[%s1817_s5 + $0x18] sm:$0xff]  ;;  %v1505_v4 = vmov 0.0   ;;  %vm1506_vm0 = vmmov 0   ;;  %s541_s27 = scalar_select %p540_p10, %s1618_s12, 1  ;;  %vm569_vm1 = vcmask 64512  }
  0x1b   : > { %1337 = vmatprep.subr.mxu0 %v1505_v4  ;;  %1339 = vmatprep.mubr.msk.f32.mxu0 %vm1506_vm0, %v1505_v4  ;;  %v648_v11 = vld [vmem:[%s1817_s5 + $0x10] sm:$0xff]  ;;  %v647_v12 = vld [vmem:[%s1817_s5 + $0x8] sm:$0xff]  ;;  %v646_v13 = vld [vmem:[%s1817_s5] sm:$0xff]  ;;  %vm657_vm3 = vcmask 261120   ;;  %vm830_vm6 = vcmask 130048   ;;  %v1507_v46 = vmov 0  }
  0x1c   : > { %1338 = vmatpush3.msra.mxu0 %v561_v1  ;;  %v1656_v5 = vshrl.u32 %v555_v2, 7  ;;  %1342 = vmatprep.subr.mxu1 %v1505_v4  ;;  %s1661_s29 = sshll.u32 %s541_s27, 3  ;;  %v737_v14 = vld [vmem:[%s1819_s7 + $0x18] sm:$0xff]  ;;  %v1293_v15 = vld [vmem:[%s1839_s4] ss:$0 sm:$0xff]  ;;  %v736_v21 = vld [vmem:[%s1819_s7 + $0x10] sm:$0xff] }
  0x1d   : > { %1343 = vmatpush3.msra.mxu1 %v649_v3  ;;  %1350 = vmatprep.mubr.msk.f32.mxu1 %vm1506_vm0, %v1505_v4  ;;  %s543_s21 = scalar_lea.vmem %s1838_s20, %s1661_s29  ;;  %v735_v22 = vld [vmem:[%s1819_s7 + $0x8] sm:$0xff]  ;;  %v734_v23 = vld [vmem:[%s1819_s7] sm:$0xff]  ;;  %s551_s22 = scalar_lea.vmem %s1840_s2, %s1661_s29  ;;  %vm997_vm9 = vcmask 7168   ;;  %vm1040_vm10 = vcmask 1041408   ;;  %vm1023_vm11 = vcmask 146432   ;;  %vm1192_vm12 = vcmask 24576  }
  0x1e   : > { %v557_v6 = vsub.s32 0, %v1656_v5  ;;  %1344 = vmatprep.subr.mxu1 %v1505_v4  ;;  %1353 = vmatprep.subr.mxu0 %v1505_v4  ;;  %v552_v7 = vld [vmem:[%s543_s21] sm:$0xff]  ;;  %v822_v30 = vld [vmem:[%s1821_s9 + $0x8] sm:$0xff]  ;;  %vm992_vm8 = vcmp.eq.s32.totalorder %v1656_v5, 0  ;;  %s547_s19 = scalar_lea.vmem %s1841_s1, %s1661_s29  ;;  %s1508_s20 = smov [#allocation3]  }
  0x1f   : > { %1345 = vmatpush3.msra.mxu1 %v648_v11  ;;  %v1295_v24 = vld [vmem:[%s1818_s6] ss:$0 sm:$0xff]  ;;  %v908_v38 = vld [vmem:[%s1823_s11 + $0x8] sm:$0xff]  ;;  %1438 = vset.pattern.permute.xlu0 %v1507_v46  ;;  %v1303_v48 = vsel %vm992_vm8, 1.0, %v1505_v4 }
  0x20   : > { %v558_v8 = vrot.slane %v552_v7, %v557_v6  ;;  %1346 = vmatprep.subr.mxu1 %v1505_v4  ;;  %v821_v31 = vld [vmem:[%s1821_s9] sm:$0xff]  ;;  %v995_v52 = vmul.f32 1e+08, %v1303_v48 }
  0x21   : > { %1347 = vmatpush3.msra.mxu1 %v647_v12  ;;  %v1297_v32 = vld [vmem:[%s1820_s8] ss:$0 sm:$0xff]  ;;  %v1033_v12 = vld [vmem:[%s1825_s13 + $0x10] sm:$0x3] }
  0x22   : > { %v559_v9 = vsub.f32 %v552_v7, %v558_v8  ;;  %1348 = vmatprep.subr.mxu1 %v1505_v4  ;;  %v907_v39 = vld [vmem:[%s1823_s11] sm:$0xff] }
  0x23   : > { %1349 = vmatpush3.msra.mxu1 %v646_v13  ;;  %v1299_v40 = vld [vmem:[%s1822_s10] ss:$0 sm:$0xff]  ;;  %v1036_v13 = vld [vmem:[%s1826_s14 + $0x10] sm:$0x3] }
  0x24   : > { %v560_v10 = vand.u32 2147483647, %v559_v9  ;;  %1364 = vmatprep.subr.mxu1 %v1505_v4  ;;  %v1301_v47 = vld [vmem:[#allocation2] ss:$0 sm:$0xff] }
  0x25   : > { %v554_v49 = vld [vmem:[%s551_s22] sm:$0xff]  ;;  %s1308_s22 = sshll.u32 %s1618_s12, 4  ;;  %s1447_s12 = sshll.u32 %s1508_s20, 4  ;;  %s1448_s12 = int_to_ptr.vmem [resolvable:$false] %s1447_s12 }
  0x26   : > { %1340 = vmatmul.mubr.msk.f32.vlgmr.msra.gmra.mxu0 %vm569_vm1, %v560_v10  ;;  %s1205_s2 = scalar_lea.hbm %s1828_s16, %s1308_s22  ;;  %s1449_s21 = scalar_lea.vmem %s1448_s12, 32 }
  0x27   : > { %1361 = vmatprep.mubr.msk.f32.mxu0 %vm1506_vm0, %v1505_v4  ;;  %1354 = vmatpush3.msra.mxu0 %v737_v14  ;;  %v1032_v14 = vld [vmem:[%s1825_s13 + $0x8] sm:$0xff] }
  0x28   : > { %1355 = vmatprep.subr.mxu0 %v1505_v4 }
  0x29   : > { %1356 = vmatpush3.msra.mxu0 %v736_v21 }
  0x2a   : > { %1357 = vmatprep.subr.mxu0 %v1505_v4 }
  0x2b   : > { %1358 = vmatpush3.msra.mxu0 %v735_v22 }
  0x2c   : > { %1359 = vmatprep.subr.mxu0 %v1505_v4 }
  0x2d   : > { %1360 = vmatpush3.msra.mxu0 %v734_v23 }
  0x2e   : > { %1371 = vmatprep.subr.mxu0 %v1505_v4 }
  0xe6   : > { %v639_v16 = vpop.f32.mrf.mxu0 }
  0xe7   : > { %v640_v17 = vadd.f32 %v1293_v15, %v639_v16  ;;  %v1035_v15 = vld [vmem:[%s1826_s14 + $0x8] sm:$0xff]  ;;  %v1031_v16 = vld [vmem:[%s1825_s13] sm:$0xff] }
  0xe8   : > { %v1341_v18 = vpop.f32.mrf.mxu0 }
  0xe9   : > { %vm643_vm2 = vcmp.ge.f32.partialorder %v640_v17, 0.0  ;;  %v644_v19 = vmul.f32 0.01, %v640_v17  ;;  %v1034_v18 = vld [vmem:[%s1826_s14] sm:$0xff] }
  0xeb   : > { %v645_v20 = vsel %vm643_vm2, %v640_v17, %v644_v19  ;;  %v553_v17 = vld [vmem:[%s547_s19] sm:$0xff]  ;;  %s538_s19 = sand.u32 1, %s1495_s24  }
  0xec   : > { %1351 = vmatmul.mubr.msk.f32.vlgmr.msra.gmra.mxu1 %vm657_vm3, %v645_v20  ;;  %s539_s3 = scalar_lea.vmem [#allocation3], %s538_s19  ;;  %s1195_s30 = scalar_lea.sflag [#allocation4], %s538_s19 }
  0xed   : > { %1368 = vmatprep.mubr.msk.f32.mxu1 %vm1506_vm0, %v1505_v4  ;;  %1365 = vmatpush3.msra.mxu1 %v822_v30  ;;  %v1190_v30 = vld [vmem:[%s1827_s15] sm:$0x1]  ;;  %s1207_s0 = sshll.u32 %s539_s3, 4  ;;  %s1208_s0 = int_to_ptr.vmem [resolvable:$true] %s1207_s0 }
  0xee   : > { %1366 = vmatprep.subr.mxu1 %v1505_v4  ;;  %s1443_s1 = scalar_lea.vmem %s1208_s0, 16  ;;  %p1450_p0 = scmp.lt.s32.totalorder %s1208_s0, %s1448_s12 }
  0xef   : > { %1367 = vmatpush3.msra.mxu1 %v821_v31  ;;  %p1444_p11 = scmp.ne.s32.totalorder %s1208_s0, %s1443_s1  ;;  %p1451_p1 = scmp.lt.s32.totalorder %s1449_s21, %s1443_s1 }
  0xf0   : > { %1378 = vmatprep.subr.mxu1 %v1505_v4 }
  0xf1   : > { %p1445_p12 = pnand %p1444_p11, %p1635_p5  ;;  %p1452_p2 = por %p1451_p1, %p1450_p0 }
  0xf3   : > { %p1446_p13 = pneg %p1445_p12 }
  0xf5   : > { %p1453_p3 = pnand %p1452_p2, %p1446_p13 }
 0x1ac   : > { %v727_v25 = vpop.f32.mrf.mxu1 }
 0x1ad   : > { %v728_v26 = vadd.f32 %v1295_v24, %v727_v25 }
 0x1ae   : > { %v1352_v27 = vpop.f32.mrf.mxu1 }
 0x1af   : > { %vm731_vm4 = vcmp.ge.f32.partialorder %v728_v26, 0.0  ;;  %v732_v28 = vmul.f32 0.01, %v728_v26 }
 0x1b1   : > { %v733_v29 = vsel %vm731_vm4, %v728_v26, %v732_v28 }
 0x1b2   : > { %1362 = vmatmul.mubr.msk.f32.vlgmr.msra.gmra.mxu0 %vm657_vm3, %v733_v29 }
 0x1b3   : > { %1375 = vmatprep.mubr.msk.f32.mxu0 %vm1506_vm0, %v1505_v4  ;;  %1372 = vmatpush3.msra.mxu0 %v908_v38 }
 0x1b4   : > { %1373 = vmatprep.subr.mxu0 %v1505_v4 }
 0x1b5   : > { %1374 = vmatpush3.msra.mxu0 %v907_v39 }
 0x1b6   : > { %1387 = vmatprep.subr.mxu0 %v1505_v4 }
 0x272   : > { %v814_v33 = vpop.f32.mrf.mxu0 }
 0x273   : > { %v815_v34 = vadd.f32 %v1297_v32, %v814_v33 }
 0x274   : > { %v1363_v35 = vpop.f32.mrf.mxu0 }
 0x275   : > { %vm818_vm5 = vcmp.ge.f32.partialorder %v815_v34, 0.0  ;;  %v819_v36 = vmul.f32 0.01, %v815_v34 }
 0x277   : > { %v820_v37 = vsel %vm818_vm5, %v815_v34, %v819_v36 }
 0x278   : > { %1369 = vmatmul.mubr.msk.f32.vlgmr.msra.gmra.mxu1 %vm830_vm6, %v820_v37 }
 0x279   : > { %1384 = vmatprep.mubr.msk.f32.mxu1 %vm1506_vm0, %v1505_v4  ;;  %1379 = vmatpush3.msk.msra.mxu1 %vm1040_vm10, %v1036_v13 }
 0x27a   : > { %1380 = vmatprep.subr.mxu1 %v1505_v4 }
 0x27b   : > { %1381 = vmatpush3.msra.mxu1 %v1035_v15 }
 0x27c   : > { %1382 = vmatprep.subr.mxu1 %v1505_v4 }
 0x27d   : > { %1383 = vmatpush3.msra.mxu1 %v1034_v18 }
 0x338   : > { %v900_v41 = vpop.f32.mrf.mxu1 }
 0x339   : > { %v901_v42 = vadd.f32 %v1299_v40, %v900_v41 }
 0x33a   : > { %v1370_v43 = vpop.f32.mrf.mxu1 }
 0x33b   : > { %vm904_vm7 = vcmp.ge.f32.partialorder %v901_v42, 0.0  ;;  %v905_v44 = vmul.f32 0.01, %v901_v42 }
 0x33d   : > { %v906_v45 = vsel %vm904_vm7, %v901_v42, %v905_v44 }
 0x33e   : > { %1376 = vmatmul.mubr.msk.f32.vlgmr.msra.gmra.mxu0 %vm830_vm6, %v906_v45 }
 0x33f   : > { %1393 = vmatprep.mubr.msk.f32.mxu0 %vm1506_vm0, %v1505_v4  ;;  %1388 = vmatpush3.msk.msra.mxu0 %vm1040_vm10, %v1033_v12 }
 0x340   : > { %1389 = vmatprep.subr.mxu0 %v1505_v4 }
 0x341   : > { %1390 = vmatpush3.msra.mxu0 %v1032_v14 }
 0x342   : > { %1391 = vmatprep.subr.mxu0 %v1505_v4 }
 0x343   : > { %1392 = vmatpush3.msra.mxu0 %v1031_v16 }
 0x344   : > { %1394 = vmatmul.mubr.msk.f32.vlgmr.msra.gmra.mxu0 %vm1023_vm11, %v553_v17 }
 0x3fe   : > { %v985_v50 = vpop.f32.mrf.mxu0 }
 0x3ff   : > { %v986_v51 = vadd.f32 %v1301_v47, %v985_v50 }
 0x400   : > { %v1377_v53 = vpop.f32.mrf.mxu0 }
 0x401   : > { %v989_v54 = vmul.f32 %v986_v51, %v554_v49 }
 0x403   : > { %v996_v55 = vsub.f32 %v989_v54, %v995_v52 }
 0x404   : > { %v1186_v4 = vpop.f32.mrf.mxu0 }
 0x405   : > { %v998_v56 = vsel %vm997_vm9, %v996_v55, -inf }
 0x406   : > { %v999_v57 = vrot.slane %v998_v56, 4  ;;  %v1395_v28 = vpop.f32.mrf.mxu0 }
 0x408   : > { %v1000_v58 = vmax.f32 %v998_v56, %v999_v57 }
 0x40a   : > { %v1001_v59 = vrot.slane %v1000_v58, 2 }
 0x40c   : > { %v1002_v60 = vmax.f32 %v1000_v58, %v1001_v59 }
 0x40e   : > { %v1003_v61 = vrot.slane %v1002_v60, 1 }
 0x410   : > { %v1004_v62 = vmax.f32 %v1002_v60, %v1003_v61 }
 0x412   : > { %v1005_v63 = vsub.f32 %v996_v55, %v1004_v62 }
 0x414   : > { %v1006_v0 = vmul.f32 1.442695, %v1005_v63 }
 0x416   : > { %1439 = vpow2.f32 %v1006_v0 }
 0x423   : > { %v1440_v1 = vpop.eup %1439 }
 0x424   : > { %v1008_v2 = vsel %vm997_vm9, %v1440_v1, 0.0 }
 0x425   : > { %v1009_v3 = vrot.slane %v1008_v2, 4 }
 0x427   : > { %v1010_v5 = vadd.f32 %v1009_v3, %v1008_v2 }
 0x429   : > { %v1011_v6 = vrot.slane %v1010_v5, 2 }
 0x42b   : > { %v1012_v7 = vadd.f32 %v1011_v6, %v1010_v5 }
 0x42d   : > { %v1013_v8 = vrot.slane %v1012_v7, 1 }
 0x42f   : > { %v1014_v9 = vadd.f32 %v1013_v8, %v1012_v7 }
 0x431   : > { %1441 = vrcp.f32 %v1014_v9 }
 0x43e   : > { %v1442_v10 = vpop.eup %1441 }
 0x43f   : > { %v1016_v11 = vmul.f32 %v1442_v10, %v1440_v1 }
 0x441   : > { %1019 = vperm.xlu0 %1438, %v1016_v11  }
 0x4bc   : > { %v1020_v19 = vpop.permute.xlu0 %1019 }
 0x4bd   : > { %v1022_v20 = vmul.f32 %v1020_v19, %v553_v17 }
 0x4bf   : > { %v1024_v21 = vsel %vm1023_vm11, %v1022_v20, 0.0 }
 0x4c0   : > { %v1025_v22 = vrot.slane %v1024_v21, 4 }
 0x4c2   : > { %v1026_v23 = vadd.f32 %v1025_v22, %v1024_v21 }
 0x4c4   : > { %v1027_v24 = vrot.slane %v1026_v23, 2 }
 0x4c6   : > { %v1028_v25 = vadd.f32 %v1027_v24, %v1026_v23 }
 0x4c8   : > { %v1029_v26 = vrot.slane %v1028_v25, 1 }
 0x4ca   : > { %v1030_v27 = vadd.f32 %v1029_v26, %v1028_v25 }
 0x4cc   : > { %1385 = vmatmul.mubr.msk.f32.vlgmr.msra.gmra.mxu1 %vm1023_vm11, %v1030_v27 }
 0x58c   : > { %v1110_v29 = vpop.f32.mrf.mxu1 }
 0x58d   : > { %v1187_v31 = vadd.f32 %v1186_v4, %v1110_v29 }
 0x58e   : > { %v1386_v32 = vpop.f32.mrf.mxu1 }
 0x58f   : > { %v1191_v33 = vadd.f32 %v1190_v30, %v1187_v31 }
 0x591   : > { %1193 = vst.msk [vmem:[%s539_s3] sm:$0x1] %vm1192_vm12, %v1191_v33 }
 0x592   : > { %1456 = shalt.err (!%p1453_p3)
}
 0x593   : > { %s1457_s4 = scalar_lea.hbm %s1205_s2, 16  ;;  %s1461_s3 = scalar_lea.hbm %s1828_s16, 32 }
 0x594   : > { %p1458_p4 = scmp.ne.s32.totalorder %s1205_s2, %s1457_s4  ;;  %p1462_p9 = scmp.lt.s32.totalorder %s1205_s2, %s1828_s16 }
 0x595   : > { %p1463_p10 = scmp.lt.s32.totalorder %s1461_s3, %s1457_s4 }
 0x596   : > { %p1459_p7 = pnand %p1458_p4, %p1635_p5 }
 0x597   : > { %p1464_p11 = por %p1463_p10, %p1462_p9 }
 0x598   : > { %p1460_p8 = pneg %p1459_p7 }
 0x59a   : > { %p1465_p12 = pnand %p1464_p11, %p1460_p8 }
 0x59c   : > { %1468 = shalt.err (!%p1465_p12)
}
 0x59d   : > { %1396 = dma.vmem_to_hbm [thread:$0]  (%p1635_p5), %s1208_s0, 16, %s1205_s2, %s1195_s30  }
 0x59e PF: > { %p1402_p13 = scmp.ge.s32.totalorder %s1503_s26, 2  ;;  %s1219_s1 = sand.u32 1, %s1491_s23  }
 0x59f   : > { %s1220_s20 = scalar_lea.sflag [#allocation4], %s1219_s1 }
 0x5a0   : > { %p1399_p0 = pnand %p1402_p13, %p1639_p6 }
 0x5a2   : > { %p1400_p1 = pneg %p1399_p0 }
 0x5a4   : > { %1486 = dma.done.wait (%p1400_p1), %s1220_s20, 16  }
 0x5a5   : > { %1488 = vsyncadd (%p1400_p1), %s1220_s20, 4294967280  ;;  %s1842_s4 = sld [smem:[#allocation6_spill]]  ;;  %p28_p2 = scmp.ge.s32.totalorder %s1622_s28, 4  }
 0x5a6   : > { %s1843_s23 = smov %s1495_s24  ;;  %s1844_s24 = smov %s1499_s25 }
 0x5a7   : > { %s1846_s26 = smov %s1622_s28  ;;  %30 = sbr.rel (!%p28_p2) target bundleno = 9 (0x9), region = 125 }
 0x5ab   : > { %s1845_s25 = smov %s1842_s4 }
 0x5ac   :  { %1224 = vsyncpa [#allocation4], 1 }
 0x5ad   :  { %1226 = vsyncpa [#allocation4 + $0x1], 1 }

// kernel: gnn_forward.2
= control target key start
LH: loop header
LB: loop body
LE: loop exit
PB: predicated region body
PF: predicated region fallthrough
CT: control target
= control target key end

     0   :  { %s2769_s0 = inlined_call_operand.vmem [shape: f32[2,8,8], index: 0, kind: input, shape index: {}]   ;;  %s2770_s1 = inlined_call_operand.vmem [shape: f32[2,8,10], index: 1, kind: input, shape index: {}]   ;;  %s2771_s2 = inlined_call_operand.vmem [shape: f32[2,8,8], index: 2, kind: input, shape index: {}]   ;;  %s2772_s3 = inlined_call_operand.vmem [shape: f32[64,8], index: 3, kind: input, shape index: {}]   ;;  %s2773_s4 = inlined_call_operand.vmem [shape: f32[64,8], index: 4, kind: input, shape index: {}]   ;;  %s2774_s5 = inlined_call_operand.vmem [shape: f32[8,64], index: 5, kind: input, shape index: {}]   ;;  %s2775_s6 = inlined_call_operand.vmem [shape: f32[8,32], index: 6, kind: input, shape index: {}]   ;;  %s2776_s7 = inlined_call_operand.vmem [shape: f32[1,32], index: 7, kind: input, shape index: {}]   ;;  %s2777_s8 = inlined_call_operand.vmem [shape: f32[32,32], index: 8, kind: input, shape index: {}]   ;;  %s2778_s9 = inlined_call_operand.vmem [shape: f32[1,32], index: 9, kind: input, shape index: {}]   ;;  %s2779_s10 = inlined_call_operand.vmem [shape: f32[32,16], index: 10, kind: input, shape index: {}]   ;;  %s2780_s11 = inlined_call_operand.vmem [shape: f32[1,16], index: 11, kind: input, shape index: {}]   ;;  %s2781_s12 = inlined_call_operand.vmem [shape: f32[16,16], index: 12, kind: input, shape index: {}]   ;;  %s2782_s13 = inlined_call_operand.hbm [shape: f32[1,16], index: 13, kind: input, shape index: {}]   ;;  %s2783_s14 = inlined_call_operand.vmem [shape: f32[16,1], index: 14, kind: input, shape index: {}]   ;;  %s2784_s15 = inlined_call_operand.<no memory space> [shape: f32[1,1], index: 15, kind: input, shape index: {}]   ;;  %s2785_s16 = inlined_call_operand.vmem [shape: f32[10,8], index: 16, kind: input, shape index: {}]   ;;  %s2786_s17 = inlined_call_operand.vmem [shape: f32[10,8], index: 17, kind: input, shape index: {}]   ;;  %s2787_s18 = inlined_call_operand.vmem [shape: f32[1,8], index: 18, kind: input, shape index: {}]   ;;  %s2788_s19 = inlined_call_operand.vmem [shape: f32[2,8,8], index: 19, kind: output, shape index: {}]  }
   0x1   :  { %2790 = sst [smem:[#allocation6_spill]] %s2769_s0  ;;  %v24_v0 = vstv %s2784_s15 }
   0x2   :  { %2791 = sst [smem:[#allocation7_spill]] %s2770_s1  ;;  %25 = vst [vmem:[#allocation2] sm:$0x1] %v24_v0 }
   0x3   :  { %2792 = sst [smem:[#allocation8_spill]] %s2771_s2 }
   0x4   :  { %2793 = sst [smem:[#allocation9_spill]] %s2772_s3 }
   0x5   :  { %26 = vsyncpa [#allocation4], 0  ;;  %s2538_s20 = smov 0  }
   0x6 LB: > { %s2074_s21 = sadd.s32 4294967295, %s2429_s20   ;;  %p2076_p0 = scmp.ge.s32.totalorder %s2429_s20, 1  ;;  %s2429_s20 = sphi %s2538_s20, %s32_s20  }
   0x7   : > { %p477_p1 = scmp.lt.s32.totalorder %s2429_s20, 3  ;;  %p2373_p3 = scmp.eq.s32.totalorder %s2074_s21, 0 }
   0x8   : > { %s2431_s15 = smov [#allocation3]  }
   0x9   : > { %p2546_p2 = pnand %p2076_p0, %p477_p1  ;;  %s520_s22 = sshll.u32 %s2431_s15, 4  ;;  %s521_s22 = int_to_ptr.vmem [resolvable:$true] %s520_s22 }
   0xa   : > { %s2404_s2 = scalar_lea.vmem %s521_s22, 16  ;;  %s2411_s23 = scalar_lea.vmem %s521_s22, 32 }
   0xb   : > { %p2369_p4 = pneg %p2546_p2  ;;  %p2405_p7 = scmp.ne.s32.totalorder %s521_s22, %s2404_s2 }
   0xc   : > { %p2412_p10 = scmp.lt.s32.totalorder %s521_s22, %s521_s22  ;;  %p2413_p11 = scmp.lt.s32.totalorder %s2411_s23, %s2404_s2 }
   0xd   : > { %p2370_p5 = pnand %p2373_p3, %p2369_p4 }
   0xe   : > { %p2414_p12 = por %p2413_p11, %p2412_p10 }
   0xf   : > { %p2395_p6 = pneg %p2370_p5 }
  0x11   : > { %p2407_p8 = pnand %p2405_p7, %p2395_p6 }
  0x13   : > { %p2408_p9 = pneg %p2407_p8 }
  0x15   : > { %p2415_p13 = pnand %p2414_p12, %p2408_p9 }
  0x17   : > { %2418 = shalt.err (!%p2415_p13)
}
  0x18   : > { %2372 = dma.hbm_to_vmem [thread:$0]  (!%p2370_p5), %s2782_s13, 16, %s521_s22, [#allocation4]  }
  0x19   : > { %569 = sbr.rel (%p2546_p2) target bundleno = 2296 (0x8f8), region = 96 }
  0x1e   : > { %2424 = dma.done.wait (%p2373_p3), [#allocation4], 16  }
  0x1f   : > { %2426 = vsyncadd (%p2373_p3), [#allocation4], 4294967280  ;;  %p631_p0 = scmp.lt.s32.totalorder %s2074_s21, 1  ;;  %s2795_s28 = sld [smem:[#allocation6_spill]]  ;;  %vm658_vm0 = vcmask 64512   ;;  %v796_v10 = vld [vmem:[%s2775_s6] sm:$0xff] }
  0x20   : > { %s2796_s15 = sld [smem:[#allocation9_spill]]  ;;  %2241 = vmatprep.subr.mxu1 %v796_v10  ;;  %v960_v11 = vld [vmem:[%s2777_s8 + $0x18] sm:$0xff]  ;;  %v959_v12 = vld [vmem:[%s2777_s8 + $0x10] sm:$0xff]  ;;  %v958_v29 = vld [vmem:[%s2777_s8 + $0x8] sm:$0xff]  ;;  %vm968_vm1 = vcmask 261120  }
  0x21   : > { %s2800_s21 = smov (!%p631_p0, %s2074_s21), 1  ;;  %2242 = vmatpush3.msra.mxu1 %v796_v10  ;;  %v957_v30 = vld [vmem:[%s2777_s8] sm:$0xff]  ;;  %v1125_v31 = vld [vmem:[%s2779_s10 + $0x18] sm:$0xff]  ;;  %v1124_v32 = vld [vmem:[%s2779_s10 + $0x10] sm:$0xff]  ;;  %s2797_s22 = sld [smem:[#allocation8_spill]] }
  0x22   : > { %s2560_s3 = sshll.u32 %s2800_s21, 3  ;;  %2275 = vmatprep.subr.mxu1 %v1125_v31  ;;  %v2093_v33 = vld [vmem:[%s2776_s7] ss:$0 sm:$0xff]  ;;  %s2798_s24 = sld [smem:[#allocation7_spill]] }
  0x25   : > { %s634_s29 = scalar_lea.vmem %s2795_s28, %s2560_s3 }
  0x26   : > { %v647_v1 = vld [vmem:[%s634_s29] sm:$0xff]  ;;  %v651_v3 = vld [vmem:[%s2796_s15 + $0x8] sm:$0xff]  ;;  %v652_v4 = vld [vmem:[%s2796_s15 + $0x10] sm:$0xff] }
  0x27   : > { %v650_v2 = vld [vmem:[%s2796_s15] sm:$0xff]  ;;  %2227 = vmatprep.subr.mxu0 %v647_v1  ;;  %v653_v5 = vld [vmem:[%s2796_s15 + $0x18] sm:$0xff]  ;;  %v655_v7 = vld [vmem:[%s2796_s15 + $0x28] sm:$0xff]  ;;  %s642_s21 = scalar_lea.vmem %s2797_s22, %s2560_s3 }
  0x28   : > { %2229 = vmatprep.mubr.msk.f32.mxu0 %vm658_vm0, %v650_v2  ;;  %2228 = vmatpush3.msra.mxu0 %v647_v1  ;;  %v654_v6 = vld [vmem:[%s2796_s15 + $0x20] sm:$0xff]  ;;  %v656_v8 = vld [vmem:[%s2796_s15 + $0x30] sm:$0xff]  ;;  %v657_v9 = vld [vmem:[%s2796_s15 + $0x38] sm:$0xff]  ;;  %s638_s25 = scalar_lea.vmem %s2798_s24, %s2560_s3 }
  0x29   : > { %2230 = vmatmul.mubr.msk.f32.vlgmr.msra.gmra.mxu0 %vm658_vm0, %v651_v3  ;;  %2255 = vmatprep.subr.mxu0 %v960_v11  ;;  %v1123_v2 = vld [vmem:[%s2779_s10 + $0x8] sm:$0xff]  ;;  %v1122_v3 = vld [vmem:[%s2779_s10] sm:$0xff] }
  0x2a   : > { %2232 = vmatprep.mubr.msk.f32.mxu0 %vm658_vm0, %v652_v4  ;;  %2256 = vmatpush3.msra.mxu0 %v960_v11  ;;  %v1287_v4 = vld [vmem:[%s2781_s12 + $0x8] sm:$0xff] }
  0x2b   : > { %2257 = vmatprep.subr.mxu0 %v959_v12 }
  0x2c   : > { %2258 = vmatpush3.msra.mxu0 %v959_v12 }
  0x2d   : > { %2233 = vmatmul.mubr.msk.f32.gmra.mxu0 %vm658_vm0, %v653_v5  ;;  %2259 = vmatprep.subr.mxu0 %v958_v29  ;;  %v2102_v5 = vld [vmem:[%s2778_s9] ss:$0 sm:$0xff] }
  0x2e   : > { %2235 = vmatprep.mubr.msk.f32.mxu0 %vm658_vm0, %v654_v6  ;;  %2260 = vmatpush3.msra.mxu0 %v958_v29 }
  0x2f   : > { %2261 = vmatprep.subr.mxu0 %v957_v30 }
  0x30   : > { %2262 = vmatpush3.msra.mxu0 %v957_v30 }
  0x31   : > { %2236 = vmatmul.mubr.msk.f32.gmra.mxu0 %vm658_vm0, %v655_v7  ;;  %2295 = vmatprep.subr.mxu0 %v1287_v4 }
  0x32   : > { %2238 = vmatprep.mubr.msk.f32.mxu0 %vm658_vm0, %v656_v8 }
  0x35   : > { %2239 = vmatmul.mubr.msk.f32.gmra.mxu0 %vm658_vm0, %v657_v9 }
  0xe9   : > { %v2231_v13 = vpop.f32.mrf.mxu0 }
  0xea   : > { %v789_v16 = vand.u32 2147483647, %v2231_v13 }
  0xeb   : > { %v749_v14 = vpop.f32.mrf.mxu0 }
  0xec   : > { %v788_v15 = vand.u32 2147483647, %v749_v14 }
  0xed   : > { %v2234_v17 = vpop.f32.mrf.mxu0 }
  0xee   : > { %2243 = vmatprep.mubr.msk.f32.mxu1 %vm658_vm0, %v788_v15  ;;  %v791_v20 = vand.u32 2147483647, %v2234_v17 }
  0xef   : > { %v759_v18 = vpop.f32.mrf.mxu0  ;;  %2244 = vmatmul.mubr.msk.f32.vlgmr.msra.gmra.mxu1 %vm658_vm0, %v789_v16 }
  0xf0   : > { %v790_v19 = vand.u32 2147483647, %v759_v18  ;;  %2276 = vmatpush3.msra.mxu1 %v1125_v31 }
  0xf1   : > { %v2237_v21 = vpop.f32.mrf.mxu0  ;;  %2277 = vmatprep.subr.mxu1 %v1124_v32 }
  0xf2   : > { %2246 = vmatprep.mubr.msk.f32.mxu1 %vm658_vm0, %v790_v19  ;;  %v793_v24 = vand.u32 2147483647, %v2237_v21  ;;  %2278 = vmatpush3.msra.mxu1 %v1124_v32 }
  0xf3   : > { %v769_v22 = vpop.f32.mrf.mxu0  ;;  %2247 = vmatmul.mubr.msk.f32.gmra.mxu1 %vm658_vm0, %v791_v20  ;;  %2279 = vmatprep.subr.mxu1 %v1123_v2 }
  0xf4   : > { %v792_v23 = vand.u32 2147483647, %v769_v22  ;;  %2280 = vmatpush3.msra.mxu1 %v1123_v2 }
  0xf5   : > { %v2240_v25 = vpop.f32.mrf.mxu0  ;;  %2281 = vmatprep.subr.mxu1 %v1122_v3 }
  0xf6   : > { %2249 = vmatprep.mubr.msk.f32.mxu1 %vm658_vm0, %v792_v23  ;;  %v795_v28 = vand.u32 2147483647, %v2240_v25  ;;  %2282 = vmatpush3.msra.mxu1 %v1122_v3 }
  0xf7   : > { %v779_v26 = vpop.f32.mrf.mxu0  ;;  %2250 = vmatmul.mubr.msk.f32.gmra.mxu1 %vm658_vm0, %v793_v24 }
  0xf8   : > { %v794_v27 = vand.u32 2147483647, %v779_v26 }
  0xfa   : > { %2252 = vmatprep.mubr.msk.f32.mxu1 %vm658_vm0, %v794_v27 }
  0xfb   : > { %2253 = vmatmul.mubr.msk.f32.gmra.mxu1 %vm658_vm0, %v795_v28 }
 0x1af   : > { %v2245_v34 = vpop.f32.mrf.mxu1 }
 0x1b0   : > { %v900_v35 = vadd.f32 %v2245_v34, %v2093_v33 }
 0x1b1   : > { %v894_v36 = vpop.f32.mrf.mxu1 }
 0x1b2   : > { %v895_v37 = vadd.f32 %v2093_v33, %v894_v36  ;;  %v942_v38 = vmul.f32 0.01, %v900_v35  ;;  %vm934_vm2 = vcmp.ge.f32.partialorder %v900_v35, 0.0 }
 0x1b3   : > { %v2248_v39 = vpop.f32.mrf.mxu1 }
 0x1b4   : > { %vm933_vm3 = vcmp.ge.f32.partialorder %v895_v37, 0.0  ;;  %v941_v40 = vmul.f32 0.01, %v895_v37  ;;  %v910_v41 = vadd.f32 %v2248_v39, %v2093_v33  ;;  %v950_v45 = vsel %vm934_vm2, %v900_v35, %v942_v38  ;;  %v1286_v38 = vld [vmem:[%s2781_s12] sm:$0xff]  ;;  %v1450_v39 = vld [vmem:[%s2783_s14 + $0x8] sm:$0xff] }
 0x1b5   : > { %v904_v42 = vpop.f32.mrf.mxu1  ;;  %2311 = vmatprep.subr.mxu1 %v1450_v39 }
 0x1b6   : > { %v905_v43 = vadd.f32 %v2093_v33, %v904_v42  ;;  %v949_v44 = vsel %vm933_vm3, %v895_v37, %v941_v40  ;;  %v944_v46 = vmul.f32 0.01, %v910_v41  ;;  %vm936_vm4 = vcmp.ge.f32.partialorder %v910_v41, 0.0  ;;  %v2111_v40 = vld [vmem:[%s2780_s11] ss:$0 sm:$0xff] }
 0x1b7   : > { %v2251_v47 = vpop.f32.mrf.mxu1  ;;  %2263 = vmatprep.mubr.msk.f32.mxu0 %vm968_vm1, %v949_v44 }
 0x1b8   : > { %vm935_vm5 = vcmp.ge.f32.partialorder %v905_v43, 0.0  ;;  %v943_v48 = vmul.f32 0.01, %v905_v43  ;;  %v920_v49 = vadd.f32 %v2251_v47, %v2093_v33  ;;  %2264 = vmatmul.mubr.msk.f32.vlgmr.msra.gmra.mxu0 %vm968_vm1, %v950_v45  ;;  %v952_v55 = vsel %vm936_vm4, %v910_v41, %v944_v46 }
 0x1b9   : > { %v914_v50 = vpop.f32.mrf.mxu1  ;;  %2296 = vmatpush3.msra.mxu0 %v1287_v4 }
 0x1ba   : > { %v915_v51 = vadd.f32 %v2093_v33, %v914_v50  ;;  %v951_v52 = vsel %vm935_vm5, %v905_v43, %v943_v48  ;;  %v946_v53 = vmul.f32 0.01, %v920_v49  ;;  %vm938_vm6 = vcmp.ge.f32.partialorder %v920_v49, 0.0  ;;  %2297 = vmatprep.subr.mxu0 %v1286_v38 }
 0x1bb   : > { %v2254_v54 = vpop.f32.mrf.mxu1  ;;  %2266 = vmatprep.mubr.msk.f32.mxu0 %vm968_vm1, %v951_v52  ;;  %2298 = vmatpush3.msra.mxu0 %v1286_v38 }
 0x1bc   : > { %vm937_vm7 = vcmp.ge.f32.partialorder %v915_v51, 0.0  ;;  %v945_v56 = vmul.f32 0.01, %v915_v51  ;;  %v930_v57 = vadd.f32 %v2254_v54, %v2093_v33  ;;  %2267 = vmatmul.mubr.msk.f32.gmra.mxu0 %vm968_vm1, %v952_v55  ;;  %v954_v62 = vsel %vm938_vm6, %v920_v49, %v946_v53 }
 0x1bd   : > { %v924_v58 = vpop.f32.mrf.mxu1 }
 0x1be   : > { %v925_v59 = vadd.f32 %v2093_v33, %v924_v58  ;;  %v953_v60 = vsel %vm937_vm7, %v915_v51, %v945_v56  ;;  %v948_v61 = vmul.f32 0.01, %v930_v57  ;;  %vm940_vm8 = vcmp.ge.f32.partialorder %v930_v57, 0.0 }
 0x1bf   : > { %2269 = vmatprep.mubr.msk.f32.mxu0 %vm968_vm1, %v953_v60 }
 0x1c0   : > { %vm939_vm9 = vcmp.ge.f32.partialorder %v925_v59, 0.0  ;;  %v947_v63 = vmul.f32 0.01, %v925_v59  ;;  %2270 = vmatmul.mubr.msk.f32.gmra.mxu0 %vm968_vm1, %v954_v62  ;;  %v956_v1 = vsel %vm940_vm8, %v930_v57, %v948_v61 }
 0x1c2   : > { %v955_v0 = vsel %vm939_vm9, %v925_v59, %v947_v63 }
 0x1c3   : > { %2272 = vmatprep.mubr.msk.f32.mxu0 %vm968_vm1, %v955_v0 }
 0x1c4   : > { %2273 = vmatmul.mubr.msk.f32.gmra.mxu0 %vm968_vm1, %v956_v1 }
 0x278   : > { %v2265_v6 = vpop.f32.mrf.mxu0 }
 0x279   : > { %v1065_v7 = vadd.f32 %v2265_v6, %v2102_v5 }
 0x27a   : > { %v1059_v8 = vpop.f32.mrf.mxu0 }
 0x27b   : > { %v1060_v9 = vadd.f32 %v2102_v5, %v1059_v8  ;;  %v1107_v10 = vmul.f32 0.01, %v1065_v7  ;;  %vm1099_vm10 = vcmp.ge.f32.partialorder %v1065_v7, 0.0 }
 0x27c   : > { %v2268_v11 = vpop.f32.mrf.mxu0 }
 0x27d   : > { %vm1098_vm11 = vcmp.ge.f32.partialorder %v1060_v9, 0.0  ;;  %v1106_v12 = vmul.f32 0.01, %v1060_v9  ;;  %v1075_v13 = vadd.f32 %v2268_v11, %v2102_v5  ;;  %v1115_v17 = vsel %vm1099_vm10, %v1065_v7, %v1107_v10  ;;  %v2120_v10 = vld [vmem:[#allocation3] ss:$0 sm:$0xff] }
 0x27e   : > { %v1069_v14 = vpop.f32.mrf.mxu0 }
 0x27f   : > { %v1070_v15 = vadd.f32 %v2102_v5, %v1069_v14  ;;  %v1114_v16 = vsel %vm1098_vm11, %v1060_v9, %v1106_v12  ;;  %v1109_v18 = vmul.f32 0.01, %v1075_v13  ;;  %vm1101_vm12 = vcmp.ge.f32.partialorder %v1075_v13, 0.0  ;;  %v1449_v9 = vld [vmem:[%s2783_s14] sm:$0xff] }
 0x280   : > { %v2271_v19 = vpop.f32.mrf.mxu0  ;;  %2283 = vmatprep.mubr.msk.f32.mxu1 %vm968_vm1, %v1114_v16 }
 0x281   : > { %vm1100_vm13 = vcmp.ge.f32.partialorder %v1070_v15, 0.0  ;;  %v1108_v20 = vmul.f32 0.01, %v1070_v15  ;;  %v1085_v21 = vadd.f32 %v2271_v19, %v2102_v5  ;;  %2284 = vmatmul.mubr.msk.f32.vlgmr.msra.gmra.mxu1 %vm968_vm1, %v1115_v17  ;;  %v1117_v27 = vsel %vm1101_vm12, %v1075_v13, %v1109_v18 }
 0x282   : > { %v1079_v22 = vpop.f32.mrf.mxu0  ;;  %2312 = vmatpush3.msra.mxu1 %v1450_v39 }
 0x283   : > { %v1080_v23 = vadd.f32 %v2102_v5, %v1079_v22  ;;  %v1116_v24 = vsel %vm1100_vm13, %v1070_v15, %v1108_v20  ;;  %v1111_v25 = vmul.f32 0.01, %v1085_v21  ;;  %vm1103_vm14 = vcmp.ge.f32.partialorder %v1085_v21, 0.0  ;;  %2313 = vmatprep.subr.mxu1 %v1449_v9 }
 0x284   : > { %v2274_v26 = vpop.f32.mrf.mxu0  ;;  %2286 = vmatprep.mubr.msk.f32.mxu1 %vm968_vm1, %v1116_v24  ;;  %2314 = vmatpush3.msra.mxu1 %v1449_v9 }
 0x285   : > { %vm1102_vm15 = vcmp.ge.f32.partialorder %v1080_v23, 0.0  ;;  %v1110_v28 = vmul.f32 0.01, %v1080_v23  ;;  %v1095_v29 = vadd.f32 %v2274_v26, %v2102_v5  ;;  %2287 = vmatmul.mubr.msk.f32.gmra.mxu1 %vm968_vm1, %v1117_v27  ;;  %v1119_v34 = vsel %vm1103_vm14, %v1085_v21, %v1111_v25 }
 0x286   : > { %v1089_v30 = vpop.f32.mrf.mxu0 }
 0x287   : > { %v1090_v31 = vadd.f32 %v2102_v5, %v1089_v30  ;;  %v1118_v32 = vsel %vm1102_vm15, %v1080_v23, %v1110_v28  ;;  %v1113_v33 = vmul.f32 0.01, %v1095_v29  ;;  %vm1105_vm2 = vcmp.ge.f32.partialorder %v1095_v29, 0.0 }
 0x288   : > { %2289 = vmatprep.mubr.msk.f32.mxu1 %vm968_vm1, %v1118_v32 }
 0x289   : > { %vm1104_vm3 = vcmp.ge.f32.partialorder %v1090_v31, 0.0  ;;  %v1112_v35 = vmul.f32 0.01, %v1090_v31  ;;  %2290 = vmatmul.mubr.msk.f32.gmra.mxu1 %vm968_vm1, %v1119_v34  ;;  %v1121_v37 = vsel %vm1105_vm2, %v1095_v29, %v1113_v33 }
 0x28b   : > { %v1120_v36 = vsel %vm1104_vm3, %v1090_v31, %v1112_v35 }
 0x28c   : > { %2292 = vmatprep.mubr.msk.f32.mxu1 %vm968_vm1, %v1120_v36 }
 0x28d   : > { %2293 = vmatmul.mubr.msk.f32.gmra.mxu1 %vm968_vm1, %v1121_v37  ;;  %vm1295_vm1 = vcmask 130048  }
 0x341   : > { %v2285_v41 = vpop.f32.mrf.mxu1 }
 0x342   : > { %v1229_v42 = vadd.f32 %v2285_v41, %v2111_v40 }
 0x343   : > { %v1223_v43 = vpop.f32.mrf.mxu1 }
 0x344   : > { %v1224_v44 = vadd.f32 %v2111_v40, %v1223_v43  ;;  %v1271_v45 = vmul.f32 0.01, %v1229_v42  ;;  %vm1263_vm4 = vcmp.ge.f32.partialorder %v1229_v42, 0.0  ;;  %v2432_v43 = vmov 0  }
 0x345   : > { %v2288_v46 = vpop.f32.mrf.mxu1  ;;  %2388 = vset.pattern.permute.xlu1 %v2432_v43  ;;  %2387 = vset.pattern.permute.xlu0 %v2432_v43 }
 0x346   : > { %vm1262_vm5 = vcmp.ge.f32.partialorder %v1224_v44, 0.0  ;;  %v1270_v47 = vmul.f32 0.01, %v1224_v44  ;;  %v1239_v48 = vadd.f32 %v2288_v46, %v2111_v40  ;;  %v1279_v52 = vsel %vm1263_vm4, %v1229_v42, %v1271_v45 }
 0x347   : > { %v1233_v49 = vpop.f32.mrf.mxu1 }
 0x348   : > { %v1234_v50 = vadd.f32 %v2111_v40, %v1233_v49  ;;  %v1278_v51 = vsel %vm1262_vm5, %v1224_v44, %v1270_v47  ;;  %v1273_v53 = vmul.f32 0.01, %v1239_v48  ;;  %vm1265_vm6 = vcmp.ge.f32.partialorder %v1239_v48, 0.0 }
 0x349   : > { %v2291_v54 = vpop.f32.mrf.mxu1  ;;  %2299 = vmatprep.mubr.msk.f32.mxu0 %vm1295_vm1, %v1278_v51 }
 0x34a   : > { %vm1264_vm7 = vcmp.ge.f32.partialorder %v1234_v50, 0.0  ;;  %v1272_v55 = vmul.f32 0.01, %v1234_v50  ;;  %v1249_v56 = vadd.f32 %v2291_v54, %v2111_v40  ;;  %2300 = vmatmul.mubr.msk.f32.vlgmr.msra.gmra.mxu0 %vm1295_vm1, %v1279_v52  ;;  %v1281_v62 = vsel %vm1265_vm6, %v1239_v48, %v1273_v53  ;;  %v2137_v53 = vld [vmem:[#allocation2] ss:$0 sm:$0xff] }
 0x34b   : > { %v1243_v57 = vpop.f32.mrf.mxu1  ;;  %vm1647_vm6 = vcmask 523264  }
 0x34c   : > { %v1244_v58 = vadd.f32 %v2111_v40, %v1243_v57  ;;  %v1280_v59 = vsel %vm1264_vm7, %v1234_v50, %v1272_v55  ;;  %v1275_v60 = vmul.f32 0.01, %v1249_v56  ;;  %vm1267_vm8 = vcmp.ge.f32.partialorder %v1249_v56, 0.0  ;;  %v1588_v55 = vld [vmem:[%s2773_s4 + $0x38] sm:$0xff] }
 0x34d   : > { %v2294_v61 = vpop.f32.mrf.mxu1  ;;  %2302 = vmatprep.mubr.msk.f32.mxu0 %vm1295_vm1, %v1280_v59  ;;  %v2433_v50 = vmov 0.0   ;;  %v1587_v59 = vld [vmem:[%s2773_s4 + $0x30] sm:$0xff] }
 0x34e   : > { %vm1266_vm9 = vcmp.ge.f32.partialorder %v1244_v58, 0.0  ;;  %v1274_v63 = vmul.f32 0.01, %v1244_v58  ;;  %v1259_v0 = vadd.f32 %v2294_v61, %v2111_v40  ;;  %2303 = vmatmul.mubr.msk.f32.gmra.mxu0 %vm1295_vm1, %v1281_v62  ;;  %v1283_v5 = vsel %vm1267_vm8, %v1249_v56, %v1275_v60  ;;  %2327 = vmatprep.subr.mxu0 %v2433_v50  ;;  %v1586_v60 = vld [vmem:[%s2773_s4 + $0x28] sm:$0xff] }
 0x34f   : > { %v1253_v1 = vpop.f32.mrf.mxu1  ;;  %2346 = vmatprep.subr.mxu1 %v2433_v50  ;;  %vm1823_vm8 = vcmask 1041408  }
 0x350   : > { %v1254_v2 = vadd.f32 %v2111_v40, %v1253_v1  ;;  %v1282_v3 = vsel %vm1266_vm9, %v1244_v58, %v1274_v63  ;;  %v1277_v4 = vmul.f32 0.01, %v1259_v0  ;;  %vm1269_vm10 = vcmp.ge.f32.partialorder %v1259_v0, 0.0  ;;  %v1585_v63 = vld [vmem:[%s2773_s4 + $0x20] sm:$0xff] }
 0x351   : > { %2305 = vmatprep.mubr.msk.f32.mxu0 %vm1295_vm1, %v1282_v3  ;;  %vm1819_vm9 = vcmask 80896  }
 0x352   : > { %vm1268_vm11 = vcmp.ge.f32.partialorder %v1254_v2, 0.0  ;;  %v1276_v6 = vmul.f32 0.01, %v1254_v2  ;;  %2306 = vmatmul.mubr.msk.f32.gmra.mxu0 %vm1295_vm1, %v1283_v5  ;;  %v1285_v8 = vsel %vm1269_vm10, %v1259_v0, %v1277_v4  ;;  %v1583_v5 = vld [vmem:[%s2773_s4 + $0x10] sm:$0xff] }
 0x354   : > { %v1284_v7 = vsel %vm1268_vm11, %v1254_v2, %v1276_v6  ;;  %v1584_v2 = vld [vmem:[%s2773_s4 + $0x18] sm:$0xff] }
 0x355   : > { %2308 = vmatprep.mubr.msk.f32.mxu0 %vm1295_vm1, %v1284_v7  ;;  %v1582_v7 = vld [vmem:[%s2773_s4 + $0x8] sm:$0xff] }
 0x356   : > { %2309 = vmatmul.mubr.msk.f32.gmra.mxu0 %vm1295_vm1, %v1285_v8 }
 0x40a   : > { %v2301_v11 = vpop.f32.mrf.mxu0 }
 0x40b   : > { %v1392_v12 = vadd.f32 %v2301_v11, %v2120_v10 }
 0x40c   : > { %v1386_v13 = vpop.f32.mrf.mxu0 }
 0x40d   : > { %v1387_v14 = vadd.f32 %v2120_v10, %v1386_v13  ;;  %v1434_v15 = vmul.f32 0.01, %v1392_v12  ;;  %vm1426_vm12 = vcmp.ge.f32.partialorder %v1392_v12, 0.0 }
 0x40e   : > { %v2304_v16 = vpop.f32.mrf.mxu0 }
 0x40f   : > { %vm1425_vm13 = vcmp.ge.f32.partialorder %v1387_v14, 0.0  ;;  %v1433_v17 = vmul.f32 0.01, %v1387_v14  ;;  %v1402_v18 = vadd.f32 %v2304_v16, %v2120_v10  ;;  %v1442_v22 = vsel %vm1426_vm12, %v1392_v12, %v1434_v15 }
 0x410   : > { %v1396_v19 = vpop.f32.mrf.mxu0  ;;  %v1722_v15 = vlaneseq }
 0x411   : > { %v1397_v20 = vadd.f32 %v2120_v10, %v1396_v19  ;;  %v1441_v21 = vsel %vm1425_vm13, %v1387_v14, %v1433_v17  ;;  %v1436_v23 = vmul.f32 0.01, %v1402_v18  ;;  %vm1428_vm14 = vcmp.ge.f32.partialorder %v1402_v18, 0.0  ;;  %v1580_v14 = vld [vmem:[%s2774_s5] sm:$0xff] }
 0x412   : > { %v2307_v24 = vpop.f32.mrf.mxu0  ;;  %2315 = vmatprep.mubr.msk.f32.mxu1 %vm1295_vm1, %v1441_v21  ;;  %v1723_v16 = vshrl.u32 %v1722_v15, 7  ;;  %v1725_v17 = vand.u32 127, %v1722_v15 }
 0x413   : > { %vm1427_vm15 = vcmp.ge.f32.partialorder %v1397_v20, 0.0  ;;  %v1435_v25 = vmul.f32 0.01, %v1397_v20  ;;  %v1412_v26 = vadd.f32 %v2307_v24, %v2120_v10  ;;  %2316 = vmatmul.mubr.msk.f32.vlgmr.msra.gmra.mxu1 %vm1295_vm1, %v1442_v22  ;;  %v1444_v32 = vsel %vm1428_vm14, %v1402_v18, %v1436_v23 }
 0x414   : > { %v1406_v27 = vpop.f32.mrf.mxu0  ;;  %vm1726_vm7 = vcmp.eq.s32.totalorder %v1723_v16, %v1725_v17 }
 0x415   : > { %v1407_v28 = vadd.f32 %v2120_v10, %v1406_v27  ;;  %v1443_v29 = vsel %vm1427_vm15, %v1397_v20, %v1435_v25  ;;  %v1438_v30 = vmul.f32 0.01, %v1412_v26  ;;  %vm1430_vm2 = vcmp.ge.f32.partialorder %v1412_v26, 0.0  ;;  %v649_v20 = vld [vmem:[%s642_s21] sm:$0xff] }
 0x416   : > { %v2310_v31 = vpop.f32.mrf.mxu0  ;;  %2318 = vmatprep.mubr.msk.f32.mxu1 %vm1295_vm1, %v1443_v29  ;;  %v2139_v18 = vsel %vm1726_vm7, 1.0, %v2433_v50 }
 0x417   : > { %vm1429_vm3 = vcmp.ge.f32.partialorder %v1407_v28, 0.0  ;;  %v1437_v33 = vmul.f32 0.01, %v1407_v28  ;;  %v1422_v34 = vadd.f32 %v2310_v31, %v2120_v10  ;;  %2319 = vmatmul.mubr.msk.f32.gmra.mxu1 %vm1295_vm1, %v1444_v32  ;;  %v1446_v39 = vsel %vm1430_vm2, %v1412_v26, %v1438_v30 }
 0x418   : > { %v1416_v35 = vpop.f32.mrf.mxu0  ;;  %v1729_v23 = vmul.f32 1e+08, %v2139_v18 }
 0x419   : > { %v1417_v36 = vadd.f32 %v2120_v10, %v1416_v35  ;;  %v1445_v37 = vsel %vm1429_vm3, %v1407_v28, %v1437_v33  ;;  %v1440_v38 = vmul.f32 0.01, %v1422_v34  ;;  %vm1432_vm4 = vcmp.ge.f32.partialorder %v1422_v34, 0.0  ;;  %v1581_v10 = vld [vmem:[%s2773_s4] sm:$0xff] }
 0x41a   : > { %2321 = vmatprep.mubr.msk.f32.mxu1 %vm1295_vm1, %v1445_v37  ;;  %v648_v33 = vld [vmem:[%s638_s25] sm:$0xff]  ;;  %s646_s25 = scalar_lea.vmem %s2788_s19, %s2560_s3 }
 0x41b   : > { %vm1431_vm5 = vcmp.ge.f32.partialorder %v1417_v36, 0.0  ;;  %v1439_v40 = vmul.f32 0.01, %v1417_v36  ;;  %2322 = vmatmul.mubr.msk.f32.gmra.mxu1 %vm1295_vm1, %v1446_v39  ;;  %v1448_v42 = vsel %vm1432_vm4, %v1422_v34, %v1440_v38  ;;  %v1818_v34 = vld [vmem:[%s2786_s17 + $0x8] sm:$0x3]  ;;  %v1815_v39 = vld [vmem:[%s2785_s16] sm:$0xff] }
 0x41c   : > { %2347 = vmatpush3.msra.mxu1 %v648_v33  ;;  %v1816_v38 = vld [vmem:[%s2785_s16 + $0x8] sm:$0x3] }
 0x41d   : > { %v1447_v41 = vsel %vm1431_vm5, %v1417_v36, %v1439_v40  ;;  %2358 = vmatprep.subr.mxu1 %v2433_v50  ;;  %v1817_v40 = vld [vmem:[%s2786_s17] sm:$0xff] }
 0x41e   : > { %2324 = vmatprep.mubr.msk.f32.mxu1 %vm1295_vm1, %v1447_v41 }
 0x41f   : > { %2325 = vmatmul.mubr.msk.f32.gmra.mxu1 %vm1295_vm1, %v1448_v42  ;;  %vm2434_vm1 = vmmov 0  }
 0x420   : > { %2343 = vmatprep.mubr.msk.f32.mxu0 %vm2434_vm1, %v2433_v50  ;;  %2348 = vmatprep.mubr.msk.f32.mxu1 %vm2434_vm1, %v2433_v50 }
 0x4d3   : > { %v2317_v44 = vpop.f32.mrf.mxu1 }
 0x4d5   : > { %v1541_v45 = vpop.f32.mrf.mxu1 }
 0x4d7   : > { %v2320_v46 = vpop.f32.mrf.mxu1 }
 0x4d9   : > { %v1551_v47 = vpop.f32.mrf.mxu1 }
 0x4db   : > { %v2323_v48 = vpop.f32.mrf.mxu1 }
 0x4dc   : > { %1616 = vperm.xlu1 %2388, %v2323_v48  }
 0x4dd   : > { %v1561_v49 = vpop.f32.mrf.mxu1 }
 0x4df   : > { %v2326_v51 = vpop.f32.mrf.mxu1 }
 0x4e0   : > { %1611 = vperm.xlu1 %2388, %v1561_v49   ;;  %1626 = vperm.xlu0 %2387, %v2326_v51  }
 0x4e1   : > { %v1571_v52 = vpop.f32.mrf.mxu1 }
 0x4e4   : > { %1601 = vperm.xlu1 %2388, %v1551_v47   ;;  %1621 = vperm.xlu0 %2387, %v1571_v52  }
 0x4e8   : > { %1591 = vperm.xlu1 %2388, %v1541_v45   ;;  %1606 = vperm.xlu0 %2387, %v2320_v46   ;;  %v2145_v46 = vld [vmem:[%s2787_s18] ss:$0 sm:$0xff] }
 0x4ec   : > { %1596 = vperm.xlu0 %2387, %v2317_v44  }
 0x4f0   : > { %1644 = vperm.xlu0 %2387, %v2137_v53  }
 0x557   : > { %v1617_v54 = vpop.permute.xlu1 %1616 }
 0x558   : > { %v1634_v0 = vmul.f32 %v1617_v54, %v1586_v60 }
 0x55b   : > { %v1627_v56 = vpop.permute.xlu0 %1626  ;;  %v1612_v58 = vpop.permute.xlu1 %1611 }
 0x55c   : > { %v1636_v57 = vmul.f32 %v1627_v56, %v1588_v55  ;;  %v1633_v4 = vmul.f32 %v1612_v58, %v1585_v63 }
 0x55e   : > { %2328 = vmatpush3.msra.mxu0 %v1636_v57 }
 0x55f   : > { %v1622_v61 = vpop.permute.xlu0 %1621  ;;  %2329 = vmatprep.subr.mxu0 %v2433_v50  ;;  %v1602_v1 = vpop.permute.xlu1 %1601 }
 0x560   : > { %v1635_v62 = vmul.f32 %v1622_v61, %v1587_v59  ;;  %v1631_v9 = vmul.f32 %v1602_v1, %v1583_v5 }
 0x562   : > { %2330 = vmatpush3.msra.mxu0 %v1635_v62 }
 0x563   : > { %2331 = vmatprep.subr.mxu0 %v2433_v50  ;;  %v1607_v3 = vpop.permute.xlu0 %1606  ;;  %v1592_v11 = vpop.permute.xlu1 %1591 }
 0x564   : > { %2332 = vmatpush3.msra.mxu0 %v1634_v0  ;;  %v1632_v6 = vmul.f32 %v1607_v3, %v1584_v2  ;;  %v1629_v13 = vmul.f32 %v1592_v11, %v1581_v10 }
 0x565   : > { %2333 = vmatprep.subr.mxu0 %v2433_v50 }
 0x566   : > { %2334 = vmatpush3.msra.mxu0 %v1633_v4 }
 0x567   : > { %2335 = vmatprep.subr.mxu0 %v2433_v50  ;;  %v1597_v8 = vpop.permute.xlu0 %1596 }
 0x568   : > { %2336 = vmatpush3.msra.mxu0 %v1632_v6  ;;  %v1630_v12 = vmul.f32 %v1597_v8, %v1582_v7 }
 0x569   : > { %2337 = vmatprep.subr.mxu0 %v2433_v50 }
 0x56a   : > { %2338 = vmatpush3.msra.mxu0 %v1631_v9 }
 0x56b   : > { %2339 = vmatprep.subr.mxu0 %v2433_v50  ;;  %v1645_v19 = vpop.permute.xlu0 %1644 }
 0x56c   : > { %2340 = vmatpush3.msra.mxu0 %v1630_v12 }
 0x56d   : > { %2341 = vmatprep.subr.mxu0 %v2433_v50 }
 0x56e   : > { %2342 = vmatpush3.msra.mxu0 %v1629_v13 }
 0x56f   : > { %2344 = vmatmul.mubr.msk.f32.vlgmr.msra.gmra.mxu0 %vm1647_vm6, %v1580_v14  ;;  %2351 = vmatprep.subr.mxu0 %v2433_v50 }
 0x570   : > { %2355 = vmatprep.mubr.msk.f32.mxu0 %vm2434_vm1, %v2433_v50  ;;  %2352 = vmatpush3.msk.msra.mxu0 %vm1823_vm8, %v1818_v34 }
 0x571   : > { %2353 = vmatprep.subr.mxu0 %v2433_v50 }
 0x572   : > { %2354 = vmatpush3.msra.mxu0 %v1817_v40 }
 0x62f   : > { %v1717_v21 = vpop.f32.mrf.mxu0 }
 0x630   : > { %v1718_v22 = vadd.f32 %v1717_v21, %v1645_v19 }
 0x631   : > { %v2345_v24 = vpop.f32.mrf.mxu0 }
 0x632   : > { %v1721_v25 = vmul.f32 %v1718_v22, %v649_v20 }
 0x634   : > { %v1730_v26 = vsub.f32 %v1721_v25, %v1729_v23 }
 0x636   : > { %v1731_v27 = vsel %vm658_vm0, %v1730_v26, -inf }
 0x637   : > { %1732 = vmax.xlane.f32.xlu1 %v1731_v27 }
 0x6c0   : > { %v1733_v28 = vpop.xlane.xlu1 %1732 }
 0x6c1   : > { %v1734_v29 = vsub.f32 %v1730_v26, %v1733_v28 }
 0x6c3   : > { %v1735_v30 = vmul.f32 1.442695, %v1734_v29 }
 0x6c5   : > { %2389 = vpow2.f32 %v1735_v30 }
 0x6d2   : > { %v2390_v31 = vpop.eup %2389 }
 0x6d3   : > { %v1737_v32 = vsel %vm658_vm0, %v2390_v31, 0.0 }
 0x6d4   : > { %1738 = vadd.xlane.f32.xlu0 %v1737_v32 }
 0x75d   : > { %v1739_v35 = vpop.xlane.xlu0 %1738 }
 0x75e   : > { %2391 = vrcp.f32 %v1739_v35 }
 0x76b   : > { %v2392_v36 = vpop.eup %2391 }
 0x76c   : > { %v1741_v37 = vmul.f32 %v2392_v36, %v2390_v31 }
 0x76e   : > { %2349 = vmatmul.mubr.msk.f32.vlgmr.msra.gmra.mxu1 %vm658_vm0, %v1741_v37 }
 0x76f   : > { %2359 = vmatpush3.msk.msra.mxu1 %vm1823_vm8, %v1816_v38  ;;  %2362 = vmatprep.mubr.msk.f32.mxu1 %vm2434_vm1, %v2433_v50 }
 0x770   : > { %2360 = vmatprep.subr.mxu1 %v2433_v50 }
 0x771   : > { %2361 = vmatpush3.msra.mxu1 %v1815_v39 }
 0x772   : > { %2363 = vmatmul.mubr.msk.f32.vlgmr.msra.gmra.mxu1 %vm1819_vm9, %v648_v33 }
 0x82e   : > { %v1811_v41 = vpop.f32.mrf.mxu1 }
 0x82f   : > { %2356 = vmatmul.mubr.msk.f32.vlgmr.msra.gmra.mxu0 %vm1819_vm9, %v1811_v41 }
 0x830   : > { %v2350_v42 = vpop.f32.mrf.mxu1 }
 0x832   : > { %v1969_v43 = vpop.f32.mrf.mxu1 }
 0x834   : > { %v2364_v44 = vpop.f32.mrf.mxu1 }
 0x8ef   : > { %v1893_v45 = vpop.f32.mrf.mxu0 }
 0x8f0   : > { %v1970_v47 = vadd.f32 %v1969_v43, %v1893_v45 }
 0x8f1   : > { %v2357_v48 = vpop.f32.mrf.mxu0 }
 0x8f2   : > { %v1980_v49 = vadd.f32 %v2145_v46, %v1970_v47 }
 0x8f4   : > { %vm1981_vm10 = vcmp.ge.f32.partialorder %v1980_v49, 0.0  ;;  %v1982_v50 = vmul.f32 0.01, %v1980_v49 }
 0x8f6   : > { %v1983_v51 = vsel %vm1981_vm10, %v1980_v49, %v1982_v50 }
 0x8f7   : > { %1984 = vst.msk [vmem:[%s646_s25] sm:$0xff] %vm658_vm0, %v1983_v51 }
 0x8f8 PF: > { %s32_s20 = sadd.s32 1, %s2429_s20  }
 0x8f9   : > { %p29_p1 = scmp.ge.s32.totalorder %s32_s20, 4  }
 0x8fb   :  { %31 = sbr.rel (!%p29_p1) target bundleno = 6 (0x6), region = 137 }
 0x900   :  { %2004 = vsyncpa [#allocation4], 1 }
 0x901   :  { %2006 = vsyncpa [#allocation4 + $0x1], 1 }

</bundles_post_ra>
